<compile_context>
chip_gen: v7x
topology: tpu7x:2x2x1
jax: 0.10.0
libtpu: 0.0.40
codegen_flags: <defaults>
</compile_context>

<pallas_src>
import math
import jax
import jax.numpy as jnp
from jax.experimental import pallas as pl
from jax.experimental.pallas import tpu as pltpu


_PARALLEL = pltpu.CompilerParams(dimension_semantics=("parallel",))


def _round_up(n, m):
    return ((n + m - 1) // m) * m


# ----------------------------------------------------------------------------
# Pallas kernels
# ----------------------------------------------------------------------------

def _make_first_conv_kernel(K, dilation, L):
    """First Conv1d, 'same' padding done in-kernel via a zero-filled VMEM scratch."""
    total = dilation * (K - 1)
    lp = total // 2                                   # PyTorch 'same': pad total//2 left

    def kernel(x_ref, w_ref, b_ref, o_ref, xpad_ref):
        # x_ref: (1, L, Cin_p) f32; w_ref: (K, Cin_p, Cp) bf16; b_ref: (1, Cp) f32
        xpad_ref[...] = jnp.zeros_like(xpad_ref)
        xpad_ref[lp:lp + L, :] = x_ref[0]
        cout = w_ref.shape[2]
        acc = jnp.zeros((L, cout), jnp.float32)
        for t in range(K):                            # static unrolled tap loop
            s = t * dilation
            acc += jnp.dot(xpad_ref[s:s + L, :].astype(jnp.bfloat16), w_ref[t],
                           preferred_element_type=jnp.float32)
        o_ref[0] = acc + b_ref[...]

    return kernel


def _make_residual_kernel(K, dilation, L, do_maxpool):
    """Fused residual block: BN1+ReLU -> dilated conv -> BN2+ReLU -> 1x1 conv + residual.

    If do_maxpool, additionally folds AdaptiveMaxPool1d(1) over L into the output.
    """
    total = dilation * (K - 1)
    lp = total // 2

    def kernel(x_ref, s1_ref, t1_ref, w1_ref, b1_ref,
               s2_ref, t2_ref, w2_ref, b2_ref, o_ref, xpad_ref):
        x = x_ref[0]                                              # (L, Cp) f32 residual
        # --- BN1 (folded affine) + ReLU prologue, zero-padded for 'same' conv ---
        a = jnp.maximum(x * s1_ref[...] + t1_ref[...], 0.0)
        xpad_ref[...] = jnp.zeros_like(xpad_ref)
        xpad_ref[lp:lp + L, :] = a
        # --- dilated K-tap conv -> bottleneck (bf16 MXU inputs, f32 accumulation) ---
        cbp = w1_ref.shape[2]
        acc = jnp.zeros((L, cbp), jnp.float32)
        for t in range(K):                                        # static unrolled taps
            s = t * dilation
            acc += jnp.dot(xpad_ref[s:s + L, :].astype(jnp.bfloat16), w1_ref[t],
                           preferred_element_type=jnp.float32)
        h = acc + b1_ref[...]
        # --- BN2 (folded affine) + ReLU ---
        h = jnp.maximum(h * s2_ref[...] + t2_ref[...], 0.0)
        # --- 1x1 conv + bias + residual add ---
        y = x + jnp.dot(h.astype(jnp.bfloat16), w2_ref[...],
                        preferred_element_type=jnp.float32) + b2_ref[...]
        if do_maxpool:
            o_ref[0] = jnp.max(y, axis=0, keepdims=True)          # fused global max-pool
        else:
            o_ref[0] = y

    return kernel


def _global_maxpool_kernel(x_ref, o_ref):
    # Only used in the degenerate num_layers == 0 case.
    o_ref[0] = jnp.max(x_ref[0], axis=0, keepdims=True)


# ----------------------------------------------------------------------------
# pallas_call wrappers
# ----------------------------------------------------------------------------

def first_conv(x, w, b, K):
    """x: (N, L, Cin_p) f32; w: (K, Cin_p, Cp) bf16; b: (1, Cp) f32."""
    N, L, Cin_p = x.shape
    Cp = w.shape[2]
    dilation = 1
    Lp = L + dilation * (K - 1)
    flops = 2 * N * L * K * Cin_p * Cp
    bytes_accessed = N * L * Cin_p * 4 + N * L * Cp * 4 + K * Cin_p * Cp * 2 + Cp * 4
    return pl.pallas_call(
        _make_first_conv_kernel(K, dilation, L),
        out_shape=jax.ShapeDtypeStruct((N, L, Cp), jnp.float32),
        grid=(N,),
        in_specs=[pl.BlockSpec((1, L, Cin_p), lambda n: (n, 0, 0)),
                  pl.BlockSpec((K, Cin_p, Cp), lambda n: (0, 0, 0)),
                  pl.BlockSpec((1, Cp), lambda n: (0, 0))],
        out_specs=pl.BlockSpec((1, L, Cp), lambda n: (n, 0, 0)),
        scratch_shapes=[pltpu.VMEM((Lp, Cin_p), jnp.float32)],
        compiler_params=_PARALLEL,
        cost_estimate=pl.CostEstimate(flops=flops, transcendentals=0,
                                      bytes_accessed=bytes_accessed),
    )(x, w, b)


def residual_block(x, lyr, K, do_maxpool):
    """x: (N, L, Cp) f32 residual stream; lyr: preprocessed layer params."""
    N, L, Cp = x.shape
    Cbp = lyr["w1"].shape[2]
    dilation = lyr["dilation"]
    Lp = L + dilation * (K - 1)
    out_L = 1 if do_maxpool else L
    flops = 2 * N * L * (K * Cp * Cbp + Cbp * Cp) + 8 * N * L * (Cp + Cbp)
    bytes_accessed = (N * L * Cp * 4 + N * out_L * Cp * 4
                      + (K * Cp * Cbp + Cbp * Cp) * 2
                      + (3 * Cp + 3 * Cbp) * 4)
    return pl.pallas_call(
        _make_residual_kernel(K, dilation, L, do_maxpool),
        out_shape=jax.ShapeDtypeStruct((N, out_L, Cp), jnp.float32),
        grid=(N,),
        in_specs=[pl.BlockSpec((1, L, Cp), lambda n: (n, 0, 0)),       # x (residual)
                  pl.BlockSpec((1, Cp), lambda n: (0, 0)),             # bn1 scale
                  pl.BlockSpec((1, Cp), lambda n: (0, 0)),             # bn1 shift
                  pl.BlockSpec((K, Cp, Cbp), lambda n: (0, 0, 0)),     # conv1 weight
                  pl.BlockSpec((1, Cbp), lambda n: (0, 0)),            # conv1 bias
                  pl.BlockSpec((1, Cbp), lambda n: (0, 0)),            # bn2 scale
                  pl.BlockSpec((1, Cbp), lambda n: (0, 0)),            # bn2 shift
                  pl.BlockSpec((Cbp, Cp), lambda n: (0, 0)),           # conv2 weight
                  pl.BlockSpec((1, Cp), lambda n: (0, 0))],            # conv2 bias
        out_specs=pl.BlockSpec((1, out_L, Cp), lambda n: (n, 0, 0)),
        scratch_shapes=[pltpu.VMEM((Lp, Cp), jnp.float32)],
        compiler_params=_PARALLEL,
        cost_estimate=pl.CostEstimate(flops=flops, transcendentals=0,
                                      bytes_accessed=bytes_accessed),
    )(x, lyr["s1"], lyr["t1"], lyr["w1"], lyr["b1"],
      lyr["s2"], lyr["t2"], lyr["w2"], lyr["b2"])


def global_maxpool(x):
    """Fallback (num_layers == 0 only): (N, L, C) -> (N, 1, C) max over L."""
    N, L, C = x.shape
    return pl.pallas_call(
        _global_maxpool_kernel,
        out_shape=jax.ShapeDtypeStruct((N, 1, C), jnp.float32),
        grid=(N,),
        in_specs=[pl.BlockSpec((1, L, C), lambda n: (n, 0, 0))],
        out_specs=pl.BlockSpec((1, 1, C), lambda n: (n, 0, 0)),
        compiler_params=_PARALLEL,
    )(x)


# ----------------------------------------------------------------------------
# Parameters: PyTorch-layout init + one-time preprocessing (fold/transposes/pads)
# ----------------------------------------------------------------------------

def init_protcnn_params(key, input_size, filters, kernel_size, num_layers,
                        first_dilated_layer, dilation_rate,
                        resnet_bottleneck_factor):
    """Deterministic synthetic init matching the PyTorch module's shapes."""
    bottleneck = math.floor(resnet_bottleneck_factor * filters)
    params = {}
    key, k0, k1 = jax.random.split(key, 3)
    params["conv0_w"] = 0.05 * jax.random.normal(k0, (filters, input_size, kernel_size), jnp.float32)
    params["conv0_b"] = 0.05 * jax.random.normal(k1, (filters,), jnp.float32)
    params["layers"] = []
    for li in range(num_layers):
        shifted = li - first_dilated_layer + 1
        dil = int(max(1, dilation_rate ** shifted))
        key, ka, kb, kc, kd = jax.random.split(key, 5)
        lyr = dict(
            dilation=dil,
            bn1_gamma=jnp.ones((filters,), jnp.float32),
            bn1_beta=jnp.zeros((filters,), jnp.float32),
            bn1_mean=jnp.zeros((filters,), jnp.float32),
            bn1_var=jnp.ones((filters,), jnp.float32),
            conv1_w=0.05 * jax.random.normal(ka, (bottleneck, filters, kernel_size), jnp.float32),
            conv1_b=0.05 * jax.random.normal(kb, (bottleneck,), jnp.float32),
            bn2_gamma=jnp.ones((bottleneck,), jnp.float32),
            bn2_beta=jnp.zeros((bottleneck,), jnp.float32),
            bn2_mean=jnp.zeros((bottleneck,), jnp.float32),
            bn2_var=jnp.ones((bottleneck,), jnp.float32),
            conv2_w=0.05 * jax.random.normal(kc, (filters, bottleneck, 1), jnp.float32),
            conv2_b=0.05 * jax.random.normal(kd, (filters,), jnp.float32),
        )
        params["layers"].append(lyr)
    return params


def preprocess_params(params, eps=1e-5, lane=128):
    """One-time fold of BN into affine, weight transposes, bf16 cast, and 128-lane
    channel padding.  Padded channels carry exact zeros through the whole network."""
    filters, cin, K = params["conv0_w"].shape
    cp = _round_up(filters, lane)
    cin_p = _round_up(cin, lane)

    def fold_bn(g, b, m, v):
        s = g / jnp.sqrt(v + eps)
        return s, b - m * s

    def pad_vec(v, n):
        return jnp.pad(v, (0, n - v.shape[0])).reshape(1, n).astype(jnp.float32)

    def pad_w3(w_kio, ip, op):                      # (K, I, O) -> padded bf16
        _, I, O = w_kio.shape
        return jnp.pad(w_kio, ((0, 0), (0, ip - I), (0, op - O))).astype(jnp.bfloat16)

    pp = dict(filters=filters, cp=cp, cin_p=cin_p, K=K)
    w0 = jnp.transpose(params["conv0_w"], (2, 1, 0))             # (K, Cin, F)
    pp["conv0_w"] = pad_w3(w0, cin_p, cp)
    pp["conv0_b"] = pad_vec(params["conv0_b"], cp)

    pp["layers"] = []
    for lyr in params["layers"]:
        cb = lyr["conv1_w"].shape[0]
        cbp = _round_up(cb, lane)
        s1, t1 = fold_bn(lyr["bn1_gamma"], lyr["bn1_beta"], lyr["bn1_mean"], lyr["bn1_var"])
        s2, t2 = fold_bn(lyr["bn2_gamma"], lyr["bn2_beta"], lyr["bn2_mean"], lyr["bn2_var"])
        w1 = jnp.transpose(lyr["conv1_w"], (2, 1, 0))            # (K, F, Cb)
        w2 = jnp.transpose(lyr["conv2_w"][:, :, 0], (1, 0))      # (Cb, F)
        pp["layers"].append(dict(
            dilation=lyr["dilation"],
            s1=pad_vec(s1, cp), t1=pad_vec(t1, cp),
            w1=pad_w3(w1, cp, cbp), b1=pad_vec(lyr["conv1_b"], cbp),
            s2=pad_vec(s2, cbp), t2=pad_vec(t2, cbp),
            w2=jnp.pad(w2, ((0, cbp - cb), (0, cp - filters))).astype(jnp.bfloat16),
            b2=pad_vec(lyr["conv2_b"], cp),
        ))
    return pp


# ----------------------------------------------------------------------------
# Forward
# ----------------------------------------------------------------------------

def protcnn_forward(x_ncl, pp):
    """x_ncl: (N, input_size, L) — same axis convention as the PyTorch module.
    Returns (N, filters, 1), matching nn.AdaptiveMaxPool1d(1) output."""
    N, Cin, L = x_ncl.shape
    K = pp["K"]
    x = jnp.transpose(x_ncl, (0, 2, 1)).astype(jnp.float32)     # -> (N, L, Cin)
    if pp["cin_p"] > Cin:                                       # lane-pad channels once
        x = jnp.pad(x, ((0, 0), (0, 0), (0, pp["cin_p"] - Cin)))

    # First conv (dilation 1, padding 'same', in-kernel padding)
    x = first_conv(x, pp["conv0_w"], pp["conv0_b"], K)          # (N, L, Cp)

    # Fused residual blocks; the last one also performs the global max-pool.
    layers = pp["layers"]
    for i, lyr in enumerate(layers):
        x = residual_block(x, lyr, K, do_maxpool=(i == len(layers) - 1))

    if not layers:                                              # degenerate config
        x = global_maxpool(x)                                   # (N, 1, Cp)

    y = x[:, :, :pp["filters"]]                                 # drop channel padding
    return jnp.transpose(y, (0, 2, 1))                          # (N, filters, 1)


# ----------------------------------------------------------------------------
# Pure-JAX reference (f32, lax.conv) for a correctness sanity check
# ----------------------------------------------------------------------------

def _reference_forward(x_ncl, params, eps=1e-5):
    x = jnp.transpose(x_ncl, (0, 2, 1)).astype(jnp.float32)     # (N, L, C)

    def conv_same(h, w_torch, b, dil):
        K = w_torch.shape[2]
        total = dil * (K - 1)
        lp = total // 2
        w = jnp.transpose(w_torch, (2, 1, 0))                   # (K, Cin, Cout)
        out = jax.lax.conv_general_dilated(
            h, w, window_strides=(1,), padding=[(lp, total - lp)],
            rhs_dilation=(dil,), dimension_numbers=("NWC", "WIO", "NWC"),
            precision=jax.lax.Precision.HIGHEST)
        return out + b.reshape(1, 1, -1)

    def bn_relu(h, g, bta, m, v):
        s = g / jnp.sqrt(v + eps)
        return jnp.maximum(h * s + (bta - m * s), 0.0)

    x = conv_same(x, params["conv0_w"], params["conv0_b"], 1)
    for lyr in params["layers"]:
        h = bn_relu(x, lyr["bn1_gamma"], lyr["bn1_beta"], lyr["bn1_mean"], lyr["bn1_var"])
        h = conv_same(h, lyr["conv1_w"], lyr["conv1_b"], lyr["dilation"])
        h = bn_relu(h, lyr["bn2_gamma"], lyr["bn2_beta"], lyr["bn2_mean"], lyr["bn2_var"])
        x = x + conv_same(h, lyr["conv2_w"], lyr["conv2_b"], 1)
    y = jnp.max(x, axis=1)                                      # (N, C)
    return y[:, :, None]                                        # (N, C, 1)


# ----------------------------------------------------------------------------
# Main
# ----------------------------------------------------------------------------

if __name__ == "__main__":
    # Small, module-consistent shapes
    N, INPUT_SIZE, L = 2, 8, 16
    FILTERS, KERNEL_SIZE, NUM_LAYERS = 32, 3, 3
    FIRST_DILATED, DIL_RATE, BOTTLENECK_FACTOR = 2, 2, 0.5

    key = jax.random.PRNGKey(0)
    key, kx = jax.random.split(key)
    x = jax.random.normal(kx, (N, INPUT_SIZE, L), jnp.float32)   # NCL like PyTorch

    params = init_protcnn_params(key, INPUT_SIZE, FILTERS, KERNEL_SIZE,
                                 NUM_LAYERS, FIRST_DILATED, DIL_RATE,
                                 BOTTLENECK_FACTOR)
    pp = preprocess_params(params)                               # fold/transpose/pad once

    fwd = jax.jit(lambda xin: protcnn_forward(xin, pp))
    y = jax.block_until_ready(fwd(x))
    assert y.shape == (N, FILTERS, 1), y.shape

    # Correctness sanity check vs. pure-JAX f32 reference (bf16 MXU inputs => loose tol).
    y_ref = jax.block_until_ready(_reference_forward(x, params))
    assert jnp.allclose(y, y_ref, rtol=5e-2, atol=5e-2), float(jnp.max(jnp.abs(y - y_ref)))

    print("KERNEL_OK")
</pallas_src>

<mosaic_0001>
module attributes {stable_mosaic.version = 11 : i64} {
  func.func @kernel(%arg0: i32, %arg1: memref<1x16x128xf32, #tpu.memory_space<vmem>>, %arg2: memref<3x128x128xbf16, #tpu.memory_space<vmem>>, %arg3: memref<1x128xf32, #tpu.memory_space<vmem>>, %arg4: memref<1x16x128xf32, #tpu.memory_space<vmem>>, %arg5: memref<18x128xf32, #tpu.memory_space<vmem>>) attributes {dimension_semantics = [#tpu.dimension_semantics<parallel>], iteration_bounds = array<i64: 2>, scalar_prefetch = 0 : i64, scratch_operands = 1 : i64, tpu.core_type = #tpu.core_type<tc>, window_params = [{transform_indices = @transform_0, window_bounds = array<i64: 1, 16, 128>}, {pipeline_mode = #tpu.pipeline_mode<synchronous>, transform_indices = @transform_1, window_bounds = array<i64: 3, 128, 128>}, {pipeline_mode = #tpu.pipeline_mode<synchronous>, transform_indices = @transform_2, window_bounds = array<i64: 1, 128>}, {transform_indices = @transform_3, window_bounds = array<i64: 1, 16, 128>}]} {
    %cst = arith.constant 0.000000e+00 : f32
    %0 = vector.broadcast %cst : f32 to vector<18x128xf32>
    %c0 = arith.constant 0 : index
    %c0_0 = arith.constant 0 : index
    %1 = vector.load %arg5[%c0, %c0_0] : memref<18x128xf32, #tpu.memory_space<vmem>>, vector<18x128xf32>
    tpu.vector_store %arg5[%c0, %c0_0], %0 {strides = array<i32>} : memref<18x128xf32, #tpu.memory_space<vmem>>, vector<18x128xf32>,
    %c0_1 = arith.constant 0 : index
    %c0_2 = arith.constant 0 : index
    %c0_3 = arith.constant 0 : index
    %2 = vector.load %arg1[%c0_1, %c0_2, %c0_3] : memref<1x16x128xf32, #tpu.memory_space<vmem>>, vector<1x16x128xf32>
    %3 = vector.shape_cast %2 : vector<1x16x128xf32> to vector<16x128xf32>
    %c1 = arith.constant 1 : index
    %c0_4 = arith.constant 0 : index
    %4 = vector.load %arg5[%c1, %c0_4] : memref<18x128xf32, #tpu.memory_space<vmem>>, vector<16x128xf32>
    tpu.vector_store %arg5[%c1, %c0_4], %3 {strides = array<i32>} : memref<18x128xf32, #tpu.memory_space<vmem>>, vector<16x128xf32>,
    %cst_5 = arith.constant 0.000000e+00 : f32
    %5 = vector.broadcast %cst_5 : f32 to vector<16x128xf32>
    %c0_6 = arith.constant 0 : index
    %c0_7 = arith.constant 0 : index
    %6 = vector.load %arg5[%c0_6, %c0_7] : memref<18x128xf32, #tpu.memory_space<vmem>>, vector<16x128xf32>
    %7 = arith.truncf %6 : vector<16x128xf32> to vector<16x128xbf16>
    %c0_8 = arith.constant 0 : index
    %c0_9 = arith.constant 0 : index
    %c0_10 = arith.constant 0 : index
    %8 = vector.load %arg2[%c0_8, %c0_9, %c0_10] : memref<3x128x128xbf16, #tpu.memory_space<vmem>>, vector<1x128x128xbf16>
    %9 = vector.shape_cast %8 : vector<1x128x128xbf16> to vector<128x128xbf16>
    %cst_11 = arith.constant dense<0.000000e+00> : vector<16x128xf32>
    %10 = tpu.matmul %7, %9, %cst_11 {dimension_numbers = #tpu.dot_dimension_numbers<[1], [0], [0], [1], [0, 0, 1, 1], [], []>} : vector<16x128xbf16>, vector<128x128xbf16>, vector<16x128xf32> -> vector<16x128xf32>
    %11 = arith.addf %5, %10 : vector<16x128xf32>
    %c1_12 = arith.constant 1 : index
    %c0_13 = arith.constant 0 : index
    %12 = vector.load %arg5[%c1_12, %c0_13] : memref<18x128xf32, #tpu.memory_space<vmem>>, vector<16x128xf32>
    %13 = arith.truncf %12 : vector<16x128xf32> to vector<16x128xbf16>
    %c1_14 = arith.constant 1 : index
    %c0_15 = arith.constant 0 : index
    %c0_16 = arith.constant 0 : index
    %14 = vector.load %arg2[%c1_14, %c0_15, %c0_16] : memref<3x128x128xbf16, #tpu.memory_space<vmem>>, vector<1x128x128xbf16>
    %15 = vector.shape_cast %14 : vector<1x128x128xbf16> to vector<128x128xbf16>
    %cst_17 = arith.constant dense<0.000000e+00> : vector<16x128xf32>
    %16 = tpu.matmul %13, %15, %cst_17 {dimension_numbers = #tpu.dot_dimension_numbers<[1], [0], [0], [1], [0, 0, 1, 1], [], []>} : vector<16x128xbf16>, vector<128x128xbf16>, vector<16x128xf32> -> vector<16x128xf32>
    %17 = arith.addf %11, %16 : vector<16x128xf32>
    %c2 = arith.constant 2 : index
    %c0_18 = arith.constant 0 : index
    %18 = vector.load %arg5[%c2, %c0_18] : memref<18x128xf32, #tpu.memory_space<vmem>>, vector<16x128xf32>
    %19 = arith.truncf %18 : vector<16x128xf32> to vector<16x128xbf16>
    %c2_19 = arith.constant 2 : index
    %c0_20 = arith.constant 0 : index
    %c0_21 = arith.constant 0 : index
    %20 = vector.load %arg2[%c2_19, %c0_20, %c0_21] : memref<3x128x128xbf16, #tpu.memory_space<vmem>>, vector<1x128x128xbf16>
    %21 = vector.shape_cast %20 : vector<1x128x128xbf16> to vector<128x128xbf16>
    %cst_22 = arith.constant dense<0.000000e+00> : vector<16x128xf32>
    %22 = tpu.matmul %19, %21, %cst_22 {dimension_numbers = #tpu.dot_dimension_numbers<[1], [0], [0], [1], [0, 0, 1, 1], [], []>} : vector<16x128xbf16>, vector<128x128xbf16>, vector<16x128xf32> -> vector<16x128xf32>
    %23 = arith.addf %17, %22 : vector<16x128xf32>
    %c0_23 = arith.constant 0 : index
    %c0_24 = arith.constant 0 : index
    %24 = vector.load %arg3[%c0_23, %c0_24] : memref<1x128xf32, #tpu.memory_space<vmem>>, vector<1x128xf32>
    %25 = vector.broadcast %24 : vector<1x128xf32> to vector<16x128xf32>
    %26 = arith.addf %23, %25 : vector<16x128xf32>
    %c0_25 = arith.constant 0 : index
    %c0_26 = arith.constant 0 : index
    %c0_27 = arith.constant 0 : index
    %27 = vector.load %arg4[%c0_25, %c0_26, %c0_27] : memref<1x16x128xf32, #tpu.memory_space<vmem>>, vector<1x16x128xf32>
    %28 = vector.shape_cast %27 : vector<1x16x128xf32> to vector<16x128xf32>
    %29 = vector.shape_cast %26 : vector<16x128xf32> to vector<1x16x128xf32>
    tpu.vector_store %arg4[%c0_25, %c0_26, %c0_27], %29 {strides = array<i32>} : memref<1x16x128xf32, #tpu.memory_space<vmem>>, vector<1x16x128xf32>,
    return
  }
  func.func @transform_0(%arg0: i32) -> (i32, i32, i32) {
    %c0_i32 = arith.constant 0 : i32
    %c0_i32_0 = arith.constant 0 : i32
    %c0_i32_1 = arith.constant 0 : i32
    return %arg0, %c0_i32, %c0_i32_0 : i32, i32, i32
  }
  func.func @transform_1(%arg0: i32) -> (i32, i32, i32) {
    %c0_i32 = arith.constant 0 : i32
    %c0_i32_0 = arith.constant 0 : i32
    %c0_i32_1 = arith.constant 0 : i32
    %c0_i32_2 = arith.constant 0 : i32
    return %c0_i32, %c0_i32_0, %c0_i32_1 : i32, i32, i32
  }
  func.func @transform_2(%arg0: i32) -> (i32, i32) {
    %c0_i32 = arith.constant 0 : i32
    %c0_i32_0 = arith.constant 0 : i32
    %c0_i32_1 = arith.constant 0 : i32
    return %c0_i32, %c0_i32_0 : i32, i32
  }
  func.func @transform_3(%arg0: i32) -> (i32, i32, i32) {
    %c0_i32 = arith.constant 0 : i32
    %c0_i32_0 = arith.constant 0 : i32
    %c0_i32_1 = arith.constant 0 : i32
    return %arg0, %c0_i32, %c0_i32_0 : i32, i32, i32
  }
}

module attributes {stable_mosaic.version = 11 : i64} {
  func.func @kernel(%arg0: i32, %arg1: memref<1x16x128xf32, #tpu.memory_space<vmem>>, %arg2: memref<1x128xf32, #tpu.memory_space<vmem>>, %arg3: memref<1x128xf32, #tpu.memory_space<vmem>>, %arg4: memref<3x128x128xbf16, #tpu.memory_space<vmem>>, %arg5: memref<1x128xf32, #tpu.memory_space<vmem>>, %arg6: memref<1x128xf32, #tpu.memory_space<vmem>>, %arg7: memref<1x128xf32, #tpu.memory_space<vmem>>, %arg8: memref<128x128xbf16, #tpu.memory_space<vmem>>, %arg9: memref<1x128xf32, #tpu.memory_space<vmem>>, %arg10: memref<1x16x128xf32, #tpu.memory_space<vmem>>, %arg11: memref<18x128xf32, #tpu.memory_space<vmem>>) attributes {dimension_semantics = [#tpu.dimension_semantics<parallel>], iteration_bounds = array<i64: 2>, scalar_prefetch = 0 : i64, scratch_operands = 1 : i64, tpu.core_type = #tpu.core_type<tc>, window_params = [{transform_indices = @transform_0, window_bounds = array<i64: 1, 16, 128>}, {pipeline_mode = #tpu.pipeline_mode<synchronous>, transform_indices = @transform_1, window_bounds = array<i64: 1, 128>}, {pipeline_mode = #tpu.pipeline_mode<synchronous>, transform_indices = @transform_2, window_bounds = array<i64: 1, 128>}, {pipeline_mode = #tpu.pipeline_mode<synchronous>, transform_indices = @transform_3, window_bounds = array<i64: 3, 128, 128>}, {pipeline_mode = #tpu.pipeline_mode<synchronous>, transform_indices = @transform_4, window_bounds = array<i64: 1, 128>}, {pipeline_mode = #tpu.pipeline_mode<synchronous>, transform_indices = @transform_5, window_bounds = array<i64: 1, 128>}, {pipeline_mode = #tpu.pipeline_mode<synchronous>, transform_indices = @transform_6, window_bounds = array<i64: 1, 128>}, {pipeline_mode = #tpu.pipeline_mode<synchronous>, transform_indices = @transform_7, window_bounds = array<i64: 128, 128>}, {pipeline_mode = #tpu.pipeline_mode<synchronous>, transform_indices = @transform_8, window_bounds = array<i64: 1, 128>}, {transform_indices = @transform_9, window_bounds = array<i64: 1, 16, 128>}]} {
    %c0 = arith.constant 0 : index
    %c0_0 = arith.constant 0 : index
    %c0_1 = arith.constant 0 : index
    %0 = vector.load %arg1[%c0, %c0_0, %c0_1] : memref<1x16x128xf32, #tpu.memory_space<vmem>>, vector<1x16x128xf32>
    %1 = vector.shape_cast %0 : vector<1x16x128xf32> to vector<16x128xf32>
    %c0_2 = arith.constant 0 : index
    %c0_3 = arith.constant 0 : index
    %2 = vector.load %arg2[%c0_2, %c0_3] : memref<1x128xf32, #tpu.memory_space<vmem>>, vector<1x128xf32>
    %3 = vector.broadcast %2 : vector<1x128xf32> to vector<16x128xf32>
    %4 = arith.mulf %1, %3 : vector<16x128xf32>
    %c0_4 = arith.constant 0 : index
    %c0_5 = arith.constant 0 : index
    %5 = vector.load %arg3[%c0_4, %c0_5] : memref<1x128xf32, #tpu.memory_space<vmem>>, vector<1x128xf32>
    %6 = vector.broadcast %5 : vector<1x128xf32> to vector<16x128xf32>
    %7 = arith.addf %4, %6 : vector<16x128xf32>
    %cst = arith.constant 0.000000e+00 : f32
    %8 = vector.broadcast %cst : f32 to vector<16x128xf32>
    %9 = arith.maximumf %7, %8 : vector<16x128xf32>
    %cst_6 = arith.constant 0.000000e+00 : f32
    %10 = vector.broadcast %cst_6 : f32 to vector<18x128xf32>
    %c0_7 = arith.constant 0 : index
    %c0_8 = arith.constant 0 : index
    %11 = vector.load %arg11[%c0_7, %c0_8] : memref<18x128xf32, #tpu.memory_space<vmem>>, vector<18x128xf32>
    tpu.vector_store %arg11[%c0_7, %c0_8], %10 {strides = array<i32>} : memref<18x128xf32, #tpu.memory_space<vmem>>, vector<18x128xf32>,
    %c1 = arith.constant 1 : index
    %c0_9 = arith.constant 0 : index
    %12 = vector.load %arg11[%c1, %c0_9] : memref<18x128xf32, #tpu.memory_space<vmem>>, vector<16x128xf32>
    tpu.vector_store %arg11[%c1, %c0_9], %9 {strides = array<i32>} : memref<18x128xf32, #tpu.memory_space<vmem>>, vector<16x128xf32>,
    %cst_10 = arith.constant 0.000000e+00 : f32
    %13 = vector.broadcast %cst_10 : f32 to vector<16x128xf32>
    %c0_11 = arith.constant 0 : index
    %c0_12 = arith.constant 0 : index
    %14 = vector.load %arg11[%c0_11, %c0_12] : memref<18x128xf32, #tpu.memory_space<vmem>>, vector<16x128xf32>
    %15 = arith.truncf %14 : vector<16x128xf32> to vector<16x128xbf16>
    %c0_13 = arith.constant 0 : index
    %c0_14 = arith.constant 0 : index
    %c0_15 = arith.constant 0 : index
    %16 = vector.load %arg4[%c0_13, %c0_14, %c0_15] : memref<3x128x128xbf16, #tpu.memory_space<vmem>>, vector<1x128x128xbf16>
    %17 = vector.shape_cast %16 : vector<1x128x128xbf16> to vector<128x128xbf16>
    %cst_16 = arith.constant dense<0.000000e+00> : vector<16x128xf32>
    %18 = tpu.matmul %15, %17, %cst_16 {dimension_numbers = #tpu.dot_dimension_numbers<[1], [0], [0], [1], [0, 0, 1, 1], [], []>} : vector<16x128xbf16>, vector<128x128xbf16>, vector<16x128xf32> -> vector<16x128xf32>
    %19 = arith.addf %13, %18 : vector<16x128xf32>
    %c1_17 = arith.constant 1 : index
    %c0_18 = arith.constant 0 : index
    %20 = vector.load %arg11[%c1_17, %c0_18] : memref<18x128xf32, #tpu.memory_space<vmem>>, vector<16x128xf32>
    %21 = arith.truncf %20 : vector<16x128xf32> to vector<16x128xbf16>
    %c1_19 = arith.constant 1 : index
    %c0_20 = arith.constant 0 : index
    %c0_21 = arith.constant 0 : index
    %22 = vector.load %arg4[%c1_19, %c0_20, %c0_21] : memref<3x128x128xbf16, #tpu.memory_space<vmem>>, vector<1x128x128xbf16>
    %23 = vector.shape_cast %22 : vector<1x128x128xbf16> to vector<128x128xbf16>
    %cst_22 = arith.constant dense<0.000000e+00> : vector<16x128xf32>
    %24 = tpu.matmul %21, %23, %cst_22 {dimension_numbers = #tpu.dot_dimension_numbers<[1], [0], [0], [1], [0, 0, 1, 1], [], []>} : vector<16x128xbf16>, vector<128x128xbf16>, vector<16x128xf32> -> vector<16x128xf32>
    %25 = arith.addf %19, %24 : vector<16x128xf32>
    %c2 = arith.constant 2 : index
    %c0_23 = arith.constant 0 : index
    %26 = vector.load %arg11[%c2, %c0_23] : memref<18x128xf32, #tpu.memory_space<vmem>>, vector<16x128xf32>
    %27 = arith.truncf %26 : vector<16x128xf32> to vector<16x128xbf16>
    %c2_24 = arith.constant 2 : index
    %c0_25 = arith.constant 0 : index
    %c0_26 = arith.constant 0 : index
    %28 = vector.load %arg4[%c2_24, %c0_25, %c0_26] : memref<3x128x128xbf16, #tpu.memory_space<vmem>>, vector<1x128x128xbf16>
    %29 = vector.shape_cast %28 : vector<1x128x128xbf16> to vector<128x128xbf16>
    %cst_27 = arith.constant dense<0.000000e+00> : vector<16x128xf32>
    %30 = tpu.matmul %27, %29, %cst_27 {dimension_numbers = #tpu.dot_dimension_numbers<[1], [0], [0], [1], [0, 0, 1, 1], [], []>} : vector<16x128xbf16>, vector<128x128xbf16>, vector<16x128xf32> -> vector<16x128xf32>
    %31 = arith.addf %25, %30 : vector<16x128xf32>
    %c0_28 = arith.constant 0 : index
    %c0_29 = arith.constant 0 : index
    %32 = vector.load %arg5[%c0_28, %c0_29] : memref<1x128xf32, #tpu.memory_space<vmem>>, vector<1x128xf32>
    %33 = vector.broadcast %32 : vector<1x128xf32> to vector<16x128xf32>
    %34 = arith.addf %31, %33 : vector<16x128xf32>
    %c0_30 = arith.constant 0 : index
    %c0_31 = arith.constant 0 : index
    %35 = vector.load %arg6[%c0_30, %c0_31] : memref<1x128xf32, #tpu.memory_space<vmem>>, vector<1x128xf32>
    %36 = vector.broadcast %35 : vector<1x128xf32> to vector<16x128xf32>
    %37 = arith.mulf %34, %36 : vector<16x128xf32>
    %c0_32 = arith.constant 0 : index
    %c0_33 = arith.constant 0 : index
    %38 = vector.load %arg7[%c0_32, %c0_33] : memref<1x128xf32, #tpu.memory_space<vmem>>, vector<1x128xf32>
    %39 = vector.broadcast %38 : vector<1x128xf32> to vector<16x128xf32>
    %40 = arith.addf %37, %39 : vector<16x128xf32>
    %cst_34 = arith.constant 0.000000e+00 : f32
    %41 = vector.broadcast %cst_34 : f32 to vector<16x128xf32>
    %42 = arith.maximumf %40, %41 : vector<16x128xf32>
    %43 = arith.truncf %42 : vector<16x128xf32> to vector<16x128xbf16>
    %c0_35 = arith.constant 0 : index
    %c0_36 = arith.constant 0 : index
    %44 = vector.load %arg8[%c0_35, %c0_36] : memref<128x128xbf16, #tpu.memory_space<vmem>>, vector<128x128xbf16>
    %cst_37 = arith.constant dense<0.000000e+00> : vector<16x128xf32>
    %45 = tpu.matmul %43, %44, %cst_37 {dimension_numbers = #tpu.dot_dimension_numbers<[1], [0], [0], [1], [0, 0, 1, 1], [], []>} : vector<16x128xbf16>, vector<128x128xbf16>, vector<16x128xf32> -> vector<16x128xf32>
    %46 = arith.addf %1, %45 : vector<16x128xf32>
    %c0_38 = arith.constant 0 : index
    %c0_39 = arith.constant 0 : index
    %47 = vector.load %arg9[%c0_38, %c0_39] : memref<1x128xf32, #tpu.memory_space<vmem>>, vector<1x128xf32>
    %48 = vector.broadcast %47 : vector<1x128xf32> to vector<16x128xf32>
    %49 = arith.addf %46, %48 : vector<16x128xf32>
    %c0_40 = arith.constant 0 : index
    %c0_41 = arith.constant 0 : index
    %c0_42 = arith.constant 0 : index
    %50 = vector.load %arg10[%c0_40, %c0_41, %c0_42] : memref<1x16x128xf32, #tpu.memory_space<vmem>>, vector<1x16x128xf32>
    %51 = vector.shape_cast %50 : vector<1x16x128xf32> to vector<16x128xf32>
    %52 = vector.shape_cast %49 : vector<16x128xf32> to vector<1x16x128xf32>
    tpu.vector_store %arg10[%c0_40, %c0_41, %c0_42], %52 {strides = array<i32>} : memref<1x16x128xf32, #tpu.memory_space<vmem>>, vector<1x16x128xf32>,
    return
  }
  func.func @transform_0(%arg0: i32) -> (i32, i32, i32) {
    %c0_i32 = arith.constant 0 : i32
    %c0_i32_0 = arith.constant 0 : i32
    %c0_i32_1 = arith.constant 0 : i32
    return %arg0, %c0_i32, %c0_i32_0 : i32, i32, i32
  }
  func.func @transform_1(%arg0: i32) -> (i32, i32) {
    %c0_i32 = arith.constant 0 : i32
    %c0_i32_0 = arith.constant 0 : i32
    %c0_i32_1 = arith.constant 0 : i32
    return %c0_i32, %c0_i32_0 : i32, i32
  }
  func.func @transform_2(%arg0: i32) -> (i32, i32) {
    %c0_i32 = arith.constant 0 : i32
    %c0_i32_0 = arith.constant 0 : i32
    %c0_i32_1 = arith.constant 0 : i32
    return %c0_i32, %c0_i32_0 : i32, i32
  }
  func.func @transform_3(%arg0: i32) -> (i32, i32, i32) {
    %c0_i32 = arith.constant 0 : i32
    %c0_i32_0 = arith.constant 0 : i32
    %c0_i32_1 = arith.constant 0 : i32
    %c0_i32_2 = arith.constant 0 : i32
    return %c0_i32, %c0_i32_0, %c0_i32_1 : i32, i32, i32
  }
  func.func @transform_4(%arg0: i32) -> (i32, i32) {
    %c0_i32 = arith.constant 0 : i32
    %c0_i32_0 = arith.constant 0 : i32
    %c0_i32_1 = arith.constant 0 : i32
    return %c0_i32, %c0_i32_0 : i32, i32
  }
  func.func @transform_5(%arg0: i32) -> (i32, i32) {
    %c0_i32 = arith.constant 0 : i32
    %c0_i32_0 = arith.constant 0 : i32
    %c0_i32_1 = arith.constant 0 : i32
    return %c0_i32, %c0_i32_0 : i32, i32
  }
  func.func @transform_6(%arg0: i32) -> (i32, i32) {
    %c0_i32 = arith.constant 0 : i32
    %c0_i32_0 = arith.constant 0 : i32
    %c0_i32_1 = arith.constant 0 : i32
    return %c0_i32, %c0_i32_0 : i32, i32
  }
  func.func @transform_7(%arg0: i32) -> (i32, i32) {
    %c0_i32 = arith.constant 0 : i32
    %c0_i32_0 = arith.constant 0 : i32
    %c0_i32_1 = arith.constant 0 : i32
    return %c0_i32, %c0_i32_0 : i32, i32
  }
  func.func @transform_8(%arg0: i32) -> (i32, i32) {
    %c0_i32 = arith.constant 0 : i32
    %c0_i32_0 = arith.constant 0 : i32
    %c0_i32_1 = arith.constant 0 : i32
    return %c0_i32, %c0_i32_0 : i32, i32
  }
  func.func @transform_9(%arg0: i32) -> (i32, i32, i32) {
    %c0_i32 = arith.constant 0 : i32
    %c0_i32_0 = arith.constant 0 : i32
    %c0_i32_1 = arith.constant 0 : i32
    return %arg0, %c0_i32, %c0_i32_0 : i32, i32, i32
  }
}

module attributes {stable_mosaic.version = 11 : i64} {
  func.func @kernel(%arg0: i32, %arg1: memref<1x16x128xf32, #tpu.memory_space<vmem>>, %arg2: memref<1x128xf32, #tpu.memory_space<vmem>>, %arg3: memref<1x128xf32, #tpu.memory_space<vmem>>, %arg4: memref<3x128x128xbf16, #tpu.memory_space<vmem>>, %arg5: memref<1x128xf32, #tpu.memory_space<vmem>>, %arg6: memref<1x128xf32, #tpu.memory_space<vmem>>, %arg7: memref<1x128xf32, #tpu.memory_space<vmem>>, %arg8: memref<128x128xbf16, #tpu.memory_space<vmem>>, %arg9: memref<1x128xf32, #tpu.memory_space<vmem>>, %arg10: memref<1x1x128xf32, #tpu.memory_space<vmem>>, %arg11: memref<20x128xf32, #tpu.memory_space<vmem>>) attributes {dimension_semantics = [#tpu.dimension_semantics<parallel>], iteration_bounds = array<i64: 2>, scalar_prefetch = 0 : i64, scratch_operands = 1 : i64, tpu.core_type = #tpu.core_type<tc>, window_params = [{transform_indices = @transform_0, window_bounds = array<i64: 1, 16, 128>}, {pipeline_mode = #tpu.pipeline_mode<synchronous>, transform_indices = @transform_1, window_bounds = array<i64: 1, 128>}, {pipeline_mode = #tpu.pipeline_mode<synchronous>, transform_indices = @transform_2, window_bounds = array<i64: 1, 128>}, {pipeline_mode = #tpu.pipeline_mode<synchronous>, transform_indices = @transform_3, window_bounds = array<i64: 3, 128, 128>}, {pipeline_mode = #tpu.pipeline_mode<synchronous>, transform_indices = @transform_4, window_bounds = array<i64: 1, 128>}, {pipeline_mode = #tpu.pipeline_mode<synchronous>, transform_indices = @transform_5, window_bounds = array<i64: 1, 128>}, {pipeline_mode = #tpu.pipeline_mode<synchronous>, transform_indices = @transform_6, window_bounds = array<i64: 1, 128>}, {pipeline_mode = #tpu.pipeline_mode<synchronous>, transform_indices = @transform_7, window_bounds = array<i64: 128, 128>}, {pipeline_mode = #tpu.pipeline_mode<synchronous>, transform_indices = @transform_8, window_bounds = array<i64: 1, 128>}, {transform_indices = @transform_9, window_bounds = array<i64: 1, 1, 128>}]} {
    %c0 = arith.constant 0 : index
    %c0_0 = arith.constant 0 : index
    %c0_1 = arith.constant 0 : index
    %0 = vector.load %arg1[%c0, %c0_0, %c0_1] : memref<1x16x128xf32, #tpu.memory_space<vmem>>, vector<1x16x128xf32>
    %1 = vector.shape_cast %0 : vector<1x16x128xf32> to vector<16x128xf32>
    %c0_2 = arith.constant 0 : index
    %c0_3 = arith.constant 0 : index
    %2 = vector.load %arg2[%c0_2, %c0_3] : memref<1x128xf32, #tpu.memory_space<vmem>>, vector<1x128xf32>
    %3 = vector.broadcast %2 : vector<1x128xf32> to vector<16x128xf32>
    %4 = arith.mulf %1, %3 : vector<16x128xf32>
    %c0_4 = arith.constant 0 : index
    %c0_5 = arith.constant 0 : index
    %5 = vector.load %arg3[%c0_4, %c0_5] : memref<1x128xf32, #tpu.memory_space<vmem>>, vector<1x128xf32>
    %6 = vector.broadcast %5 : vector<1x128xf32> to vector<16x128xf32>
    %7 = arith.addf %4, %6 : vector<16x128xf32>
    %cst = arith.constant 0.000000e+00 : f32
    %8 = vector.broadcast %cst : f32 to vector<16x128xf32>
    %9 = arith.maximumf %7, %8 : vector<16x128xf32>
    %cst_6 = arith.constant 0.000000e+00 : f32
    %10 = vector.broadcast %cst_6 : f32 to vector<20x128xf32>
    %c0_7 = arith.constant 0 : index
    %c0_8 = arith.constant 0 : index
    %11 = vector.load %arg11[%c0_7, %c0_8] : memref<20x128xf32, #tpu.memory_space<vmem>>, vector<20x128xf32>
    tpu.vector_store %arg11[%c0_7, %c0_8], %10 {strides = array<i32>} : memref<20x128xf32, #tpu.memory_space<vmem>>, vector<20x128xf32>,
    %c2 = arith.constant 2 : index
    %c0_9 = arith.constant 0 : index
    %12 = vector.load %arg11[%c2, %c0_9] : memref<20x128xf32, #tpu.memory_space<vmem>>, vector<16x128xf32>
    tpu.vector_store %arg11[%c2, %c0_9], %9 {strides = array<i32>} : memref<20x128xf32, #tpu.memory_space<vmem>>, vector<16x128xf32>,
    %cst_10 = arith.constant 0.000000e+00 : f32
    %13 = vector.broadcast %cst_10 : f32 to vector<16x128xf32>
    %c0_11 = arith.constant 0 : index
    %c0_12 = arith.constant 0 : index
    %14 = vector.load %arg11[%c0_11, %c0_12] : memref<20x128xf32, #tpu.memory_space<vmem>>, vector<16x128xf32>
    %15 = arith.truncf %14 : vector<16x128xf32> to vector<16x128xbf16>
    %c0_13 = arith.constant 0 : index
    %c0_14 = arith.constant 0 : index
    %c0_15 = arith.constant 0 : index
    %16 = vector.load %arg4[%c0_13, %c0_14, %c0_15] : memref<3x128x128xbf16, #tpu.memory_space<vmem>>, vector<1x128x128xbf16>
    %17 = vector.shape_cast %16 : vector<1x128x128xbf16> to vector<128x128xbf16>
    %cst_16 = arith.constant dense<0.000000e+00> : vector<16x128xf32>
    %18 = tpu.matmul %15, %17, %cst_16 {dimension_numbers = #tpu.dot_dimension_numbers<[1], [0], [0], [1], [0, 0, 1, 1], [], []>} : vector<16x128xbf16>, vector<128x128xbf16>, vector<16x128xf32> -> vector<16x128xf32>
    %19 = arith.addf %13, %18 : vector<16x128xf32>
    %c2_17 = arith.constant 2 : index
    %c0_18 = arith.constant 0 : index
    %20 = vector.load %arg11[%c2_17, %c0_18] : memref<20x128xf32, #tpu.memory_space<vmem>>, vector<16x128xf32>
    %21 = arith.truncf %20 : vector<16x128xf32> to vector<16x128xbf16>
    %c1 = arith.constant 1 : index
    %c0_19 = arith.constant 0 : index
    %c0_20 = arith.constant 0 : index
    %22 = vector.load %arg4[%c1, %c0_19, %c0_20] : memref<3x128x128xbf16, #tpu.memory_space<vmem>>, vector<1x128x128xbf16>
    %23 = vector.shape_cast %22 : vector<1x128x128xbf16> to vector<128x128xbf16>
    %cst_21 = arith.constant dense<0.000000e+00> : vector<16x128xf32>
    %24 = tpu.matmul %21, %23, %cst_21 {dimension_numbers = #tpu.dot_dimension_numbers<[1], [0], [0], [1], [0, 0, 1, 1], [], []>} : vector<16x128xbf16>, vector<128x128xbf16>, vector<16x128xf32> -> vector<16x128xf32>
    %25 = arith.addf %19, %24 : vector<16x128xf32>
    %c4 = arith.constant 4 : index
    %c0_22 = arith.constant 0 : index
    %26 = vector.load %arg11[%c4, %c0_22] : memref<20x128xf32, #tpu.memory_space<vmem>>, vector<16x128xf32>
    %27 = arith.truncf %26 : vector<16x128xf32> to vector<16x128xbf16>
    %c2_23 = arith.constant 2 : index
    %c0_24 = arith.constant 0 : index
    %c0_25 = arith.constant 0 : index
    %28 = vector.load %arg4[%c2_23, %c0_24, %c0_25] : memref<3x128x128xbf16, #tpu.memory_space<vmem>>, vector<1x128x128xbf16>
    %29 = vector.shape_cast %28 : vector<1x128x128xbf16> to vector<128x128xbf16>
    %cst_26 = arith.constant dense<0.000000e+00> : vector<16x128xf32>
    %30 = tpu.matmul %27, %29, %cst_26 {dimension_numbers = #tpu.dot_dimension_numbers<[1], [0], [0], [1], [0, 0, 1, 1], [], []>} : vector<16x128xbf16>, vector<128x128xbf16>, vector<16x128xf32> -> vector<16x128xf32>
    %31 = arith.addf %25, %30 : vector<16x128xf32>
    %c0_27 = arith.constant 0 : index
    %c0_28 = arith.constant 0 : index
    %32 = vector.load %arg5[%c0_27, %c0_28] : memref<1x128xf32, #tpu.memory_space<vmem>>, vector<1x128xf32>
    %33 = vector.broadcast %32 : vector<1x128xf32> to vector<16x128xf32>
    %34 = arith.addf %31, %33 : vector<16x128xf32>
    %c0_29 = arith.constant 0 : index
    %c0_30 = arith.constant 0 : index
    %35 = vector.load %arg6[%c0_29, %c0_30] : memref<1x128xf32, #tpu.memory_space<vmem>>, vector<1x128xf32>
    %36 = vector.broadcast %35 : vector<1x128xf32> to vector<16x128xf32>
    %37 = arith.mulf %34, %36 : vector<16x128xf32>
    %c0_31 = arith.constant 0 : index
    %c0_32 = arith.constant 0 : index
    %38 = vector.load %arg7[%c0_31, %c0_32] : memref<1x128xf32, #tpu.memory_space<vmem>>, vector<1x128xf32>
    %39 = vector.broadcast %38 : vector<1x128xf32> to vector<16x128xf32>
    %40 = arith.addf %37, %39 : vector<16x128xf32>
    %cst_33 = arith.constant 0.000000e+00 : f32
    %41 = vector.broadcast %cst_33 : f32 to vector<16x128xf32>
    %42 = arith.maximumf %40, %41 : vector<16x128xf32>
    %43 = arith.truncf %42 : vector<16x128xf32> to vector<16x128xbf16>
    %c0_34 = arith.constant 0 : index
    %c0_35 = arith.constant 0 : index
    %44 = vector.load %arg8[%c0_34, %c0_35] : memref<128x128xbf16, #tpu.memory_space<vmem>>, vector<128x128xbf16>
    %cst_36 = arith.constant dense<0.000000e+00> : vector<16x128xf32>
    %45 = tpu.matmul %43, %44, %cst_36 {dimension_numbers = #tpu.dot_dimension_numbers<[1], [0], [0], [1], [0, 0, 1, 1], [], []>} : vector<16x128xbf16>, vector<128x128xbf16>, vector<16x128xf32> -> vector<16x128xf32>
    %46 = arith.addf %1, %45 : vector<16x128xf32>
    %c0_37 = arith.constant 0 : index
    %c0_38 = arith.constant 0 : index
    %47 = vector.load %arg9[%c0_37, %c0_38] : memref<1x128xf32, #tpu.memory_space<vmem>>, vector<1x128xf32>
    %48 = vector.broadcast %47 : vector<1x128xf32> to vector<16x128xf32>
    %49 = arith.addf %46, %48 : vector<16x128xf32>
    %cst_39 = arith.constant dense<0xFF800000> : vector<128xf32>
    %50 = vector.multi_reduction <maximumf>, %49, %cst_39 [0] : vector<16x128xf32> to vector<128xf32>
    %51 = vector.shape_cast %50 : vector<128xf32> to vector<1x128xf32>
    %c0_40 = arith.constant 0 : index
    %c0_41 = arith.constant 0 : index
    %c0_42 = arith.constant 0 : index
    %52 = vector.load %arg10[%c0_40, %c0_41, %c0_42] : memref<1x1x128xf32, #tpu.memory_space<vmem>>, vector<1x1x128xf32>
    %53 = vector.shape_cast %52 : vector<1x1x128xf32> to vector<1x128xf32>
    %54 = vector.shape_cast %51 : vector<1x128xf32> to vector<1x1x128xf32>
    tpu.vector_store %arg10[%c0_40, %c0_41, %c0_42], %54 {strides = array<i32>} : memref<1x1x128xf32, #tpu.memory_space<vmem>>, vector<1x1x128xf32>,
    return
  }
  func.func @transform_0(%arg0: i32) -> (i32, i32, i32) {
    %c0_i32 = arith.constant 0 : i32
    %c0_i32_0 = arith.constant 0 : i32
    %c0_i32_1 = arith.constant 0 : i32
    return %arg0, %c0_i32, %c0_i32_0 : i32, i32, i32
  }
  func.func @transform_1(%arg0: i32) -> (i32, i32) {
    %c0_i32 = arith.constant 0 : i32
    %c0_i32_0 = arith.constant 0 : i32
    %c0_i32_1 = arith.constant 0 : i32
    return %c0_i32, %c0_i32_0 : i32, i32
  }
  func.func @transform_2(%arg0: i32) -> (i32, i32) {
    %c0_i32 = arith.constant 0 : i32
    %c0_i32_0 = arith.constant 0 : i32
    %c0_i32_1 = arith.constant 0 : i32
    return %c0_i32, %c0_i32_0 : i32, i32
  }
  func.func @transform_3(%arg0: i32) -> (i32, i32, i32) {
    %c0_i32 = arith.constant 0 : i32
    %c0_i32_0 = arith.constant 0 : i32
    %c0_i32_1 = arith.constant 0 : i32
    %c0_i32_2 = arith.constant 0 : i32
    return %c0_i32, %c0_i32_0, %c0_i32_1 : i32, i32, i32
  }
  func.func @transform_4(%arg0: i32) -> (i32, i32) {
    %c0_i32 = arith.constant 0 : i32
    %c0_i32_0 = arith.constant 0 : i32
    %c0_i32_1 = arith.constant 0 : i32
    return %c0_i32, %c0_i32_0 : i32, i32
  }
  func.func @transform_5(%arg0: i32) -> (i32, i32) {
    %c0_i32 = arith.constant 0 : i32
    %c0_i32_0 = arith.constant 0 : i32
    %c0_i32_1 = arith.constant 0 : i32
    return %c0_i32, %c0_i32_0 : i32, i32
  }
  func.func @transform_6(%arg0: i32) -> (i32, i32) {
    %c0_i32 = arith.constant 0 : i32
    %c0_i32_0 = arith.constant 0 : i32
    %c0_i32_1 = arith.constant 0 : i32
    return %c0_i32, %c0_i32_0 : i32, i32
  }
  func.func @transform_7(%arg0: i32) -> (i32, i32) {
    %c0_i32 = arith.constant 0 : i32
    %c0_i32_0 = arith.constant 0 : i32
    %c0_i32_1 = arith.constant 0 : i32
    return %c0_i32, %c0_i32_0 : i32, i32
  }
  func.func @transform_8(%arg0: i32) -> (i32, i32) {
    %c0_i32 = arith.constant 0 : i32
    %c0_i32_0 = arith.constant 0 : i32
    %c0_i32_1 = arith.constant 0 : i32
    return %c0_i32, %c0_i32_0 : i32, i32
  }
  func.func @transform_9(%arg0: i32) -> (i32, i32, i32) {
    %c0_i32 = arith.constant 0 : i32
    %c0_i32_0 = arith.constant 0 : i32
    %c0_i32_1 = arith.constant 0 : i32
    return %arg0, %c0_i32, %c0_i32_0 : i32, i32, i32
  }
}

</mosaic_0001>

<bundles_post_ra>
// kernel: _lambda_.4
= control target key start
LH: loop header
LB: loop body
LE: loop exit
PB: predicated region body
PF: predicated region fallthrough
CT: control target
= control target key end

     0   :  { %8 = vsyncpa [#allocation4], 0  ;;  %s839_s12 = smov 0   ;;  %s938_s0 = inlined_call_operand.vmem [shape: f32[2,16,128], index: 0, kind: input, shape index: {}]   ;;  %s939_s1 = inlined_call_operand.hbm [shape: bf16[3,128,128], index: 1, kind: input, shape index: {}]   ;;  %s940_s2 = inlined_call_operand.vmem [shape: f32[1,128], index: 2, kind: input, shape index: {}]   ;;  %s941_s3 = inlined_call_operand.vmem [shape: f32[2,16,128], index: 3, kind: output, shape index: {}]  }
   0x1 LB: > { %s845_s13 = sadd.s32 4294967295, %s812_s12   ;;  %p602_p0 = scmp.ge.s32.totalorder %s812_s12, 1  ;;  %s812_s12 = sphi %s839_s12, %s14_s12  }
   0x2   : > { %p113_p1 = scmp.lt.s32.totalorder %s812_s12, 3  ;;  %s814_s14 = smov [#allocation3]  }
   0x3   : > { %s125_s15 = sshll.u32 %s814_s14, 4  ;;  %p942_p3 = scmp.eq.s32.totalorder %s845_s13, 0  ;;  %s126_s15 = int_to_ptr.vmem [resolvable:$true] %s125_s15 }
   0x4   : > { %p849_p2 = pnand %p602_p0, %p113_p1  ;;  %s774_s20 = scalar_lea.hbm %s939_s1, 3072 }
   0x5   : > { %p775_p6 = scmp.ne.s32.totalorder %s939_s1, %s774_s20  ;;  %p781_p10 = scmp.lt.u32.totalorder %s774_s20, %s939_s1 }
   0x6   : > { %s944_s16 = scalar_select %p849_p2, 1, 0 }
   0x7   : > { %p731_p4 = pneg %p849_p2 }
   0x9   : > { %p858_p5 = pnand %p942_p3, %p731_p4 }
   0xb   : > { %p776_p7 = pneg %p858_p5 }
   0xd   : > { %p777_p8 = pnand %p776_p7, %p775_p6 }
   0xf   : > { %p778_p9 = pneg %p777_p8 }
  0x11   : > { %p783_p11 = pnand %p781_p10, %p778_p9 }
  0x13   : > { %786 = shalt.err (!%p783_p11)
}
  0x14   : > { %s787_s25 = scalar_lea.vmem %s126_s15, 3072  ;;  %p795_p1 = scmp.lt.s32.totalorder %s126_s15, %s126_s15 }
  0x15   : > { %p788_p12 = scmp.ne.s32.totalorder %s126_s15, %s787_s25  ;;  %p796_p4 = scmp.lt.s32.totalorder %s787_s25, %s787_s25 }
  0x17   : > { %p790_p13 = pnand %p788_p12, %p776_p7  ;;  %p797_p3 = por %p796_p4, %p795_p1 }
  0x19   : > { %p791_p0 = pneg %p790_p13 }
  0x1b   : > { %p798_p2 = pnand %p797_p3, %p791_p0 }
  0x1d   : > { %801 = shalt.err (!%p798_p2)
}
  0x1e   : > { %s815_s26 = smov 64   ;;  %s816_s27 = smov 4  }
  0x1f   : > { %734 = dma.hbm_to_vmem [thread:$0]  (!%p858_p5), %s939_s1, 3072, %s126_s15, [#allocation4], %s815_s26, %s815_s26, %s816_s27  }
  0x20   : > { %p946_p6 = scmp.ne.s32.totalorder %s944_s16, 0 }
  0x21   : > { %p947_p8 = scmp.eq.s32.totalorder (!%p946_p6), %s845_s13, 0 }
  0x22   : > { %152 = sbr.rel (%p946_p6) target bundleno = 327 (0x147), region = 32 }
  0x29   : > { %807 = dma.done.wait (%p947_p8), [#allocation4], 3072   ;;  %p948_p7 = pmov %p947_p8 }
  0x2a   : > { %v817_v0 = vmov 0.0   ;;  %vm818_vm0 = vmmov 0   ;;  %v750_v1 = vld [vmem:[#allocation3 + $0x40] sm:$0xff]   ;;  %v752_v3 = vld [vmem:[#allocation3 + $0x48] sm:$0xff]   ;;  %p176_p2 = scmp.lt.s32.totalorder %s845_s13, 1  ;;  %v754_v5 = vld [vmem:[#allocation3 + $0x50] sm:$0xff]  }
  0x2b   : > { %809 = vsyncadd (%p948_p7), [#allocation4], 4294964224  ;;  %667 = vmatprep.subr.bf16.mxu0 %v817_v0  ;;  %187 = vst [vmem:[#allocation2] sm:$0xff] %v817_v0  ;;  %687 = vmatprep.subr.bf16.mxu1 %v817_v0  ;;  %v751_v2 = vld [vmem:[#allocation3] sm:$0xff]   ;;  %v753_v4 = vld [vmem:[#allocation3 + $0x8] sm:$0xff]  }
  0x2c   : > { %188 = vst [vmem:[#allocation2 + $0x8] sm:$0xff] %v817_v0  ;;  %189 = vst [vmem:[#allocation2 + $0x10] sm:$0x3] %v817_v0  ;;  %683 = vmatprep.mubr.msk.bf16.mxu0 %vm818_vm0, %v817_v0  ;;  %703 = vmatprep.mubr.msk.bf16.mxu1 %vm818_vm0, %v817_v0  ;;  %s950_s13 = smov (!%p176_p2, %s845_s13), 1  ;;  %v755_v6 = vld [vmem:[#allocation3 + $0x10] sm:$0xff]   ;;  %v756_v7 = vld [vmem:[#allocation3 + $0x58] sm:$0xff]  }
  0x2d   : > { %668 = vmatpush3.bf16.msra.mxu0 %v750_v1  ;;  %688 = vmatpush3.bf16.msra.mxu1 %v751_v2  ;;  %s638_s30 = sshll.u32 %s950_s13, 4  ;;  %v757_v8 = vld [vmem:[#allocation3 + $0x18] sm:$0xff]   ;;  %v758_v9 = vld [vmem:[#allocation3 + $0x60] sm:$0xff]   ;;  %v760_v13 = vld [vmem:[#allocation3 + $0x68] sm:$0xff]  }
  0x2e   : > { %669 = vmatprep.subr.bf16.mxu0 %v817_v0  ;;  %689 = vmatprep.subr.bf16.mxu1 %v817_v0  ;;  %s180_s6 = scalar_lea.vmem %s938_s0, %s638_s30  ;;  %v759_v10 = vld [vmem:[#allocation3 + $0x20] sm:$0xff]   ;;  %v761_v14 = vld [vmem:[#allocation3 + $0x28] sm:$0xff]   ;;  %v762_v15 = vld [vmem:[#allocation3 + $0x70] sm:$0xff]   ;;  %s185_s11 = scalar_lea.vmem %s941_s3, %s638_s30 }
  0x2f   : > { %v190_v11 = vld [vmem:[%s180_s6] sm:$0xff]  ;;  %v191_v12 = vld [vmem:[%s180_s6 + $0x8] sm:$0xff]  ;;  %v764_v17 = vld [vmem:[#allocation3 + $0x78] sm:$0xff]  }
  0x30   : > { %192 = vst [vmem:[#allocation2 + $0x1] sm:$0xff] %v190_v11  ;;  %193 = vst [vmem:[#allocation2 + $0x9] sm:$0xff] %v191_v12  ;;  %v763_v16 = vld [vmem:[#allocation3 + $0x30] sm:$0xff]   ;;  %v765_v18 = vld [vmem:[#allocation3 + $0x38] sm:$0xff]   ;;  %v215_v21 = vpack.c.bf16 %v191_v12, %v190_v11 }
  0x31   : > { %670 = vmatpush3.bf16.msra.mxu0 %v752_v3  ;;  %690 = vmatpush3.bf16.msra.mxu1 %v753_v4  ;;  %v766_v23 = vld [vmem:[#allocation3 + $0x80] sm:$0xff]   ;;  %v767_v24 = vld [vmem:[#allocation3 + $0x88] sm:$0xff]   ;;  %v768_v25 = vld [vmem:[#allocation3 + $0x90] sm:$0xff]  }
  0x32   : > { %671 = vmatprep.subr.bf16.mxu0 %v817_v0  ;;  %691 = vmatprep.subr.bf16.mxu1 %v817_v0  ;;  %v769_v26 = vld [vmem:[#allocation3 + $0x98] sm:$0xff]   ;;  %v770_v27 = vld [vmem:[#allocation3 + $0xa0] sm:$0xff]   ;;  %v771_v28 = vld [vmem:[#allocation3 + $0xa8] sm:$0xff]  }
  0x33   : > { %v772_v29 = vld [vmem:[#allocation3 + $0xb0] sm:$0xff]   ;;  %v773_v30 = vld [vmem:[#allocation3 + $0xb8] sm:$0xff]   ;;  %v635_v45 = vld [vmem:[%s940_s2] ss:$0 sm:$0xff] }
  0x35   : > { %672 = vmatpush3.bf16.msra.mxu0 %v754_v5  ;;  %692 = vmatpush3.bf16.msra.mxu1 %v755_v6 }
  0x36   : > { %673 = vmatprep.subr.bf16.mxu0 %v817_v0  ;;  %693 = vmatprep.subr.bf16.mxu1 %v817_v0 }
  0x37   : > { %v194_v19 = vld [vmem:[#allocation2] sm:$0xff]  ;;  %v195_v20 = vld [vmem:[#allocation2 + $0x8] sm:$0xff] }
  0x38   : > { %v196_v22 = vpack.c.bf16 %v195_v20, %v194_v19  ;;  %v411_v31 = vld [vmem:[#allocation2 + $0x2] sm:$0xff]  ;;  %v412_v32 = vld [vmem:[#allocation2 + $0xa] sm:$0xff] }
  0x39   : > { %674 = vmatpush3.bf16.msra.mxu0 %v756_v7  ;;  %694 = vmatpush3.bf16.msra.mxu1 %v757_v8  ;;  %v413_v33 = vpack.c.bf16 %v412_v32, %v411_v31 }
  0x3a   : > { %675 = vmatprep.subr.bf16.mxu0 %v817_v0  ;;  %695 = vmatprep.subr.bf16.mxu1 %v817_v0 }
  0x3d   : > { %676 = vmatpush3.bf16.msra.mxu0 %v758_v9  ;;  %696 = vmatpush3.bf16.msra.mxu1 %v759_v10 }
  0x3e   : > { %677 = vmatprep.subr.bf16.mxu0 %v817_v0  ;;  %697 = vmatprep.subr.bf16.mxu1 %v817_v0 }
  0x41   : > { %678 = vmatpush3.bf16.msra.mxu0 %v760_v13  ;;  %698 = vmatpush3.bf16.msra.mxu1 %v761_v14 }
  0x42   : > { %679 = vmatprep.subr.bf16.mxu0 %v817_v0  ;;  %699 = vmatprep.subr.bf16.mxu1 %v817_v0 }
  0x45   : > { %680 = vmatpush3.bf16.msra.mxu0 %v762_v15  ;;  %700 = vmatpush3.bf16.msra.mxu1 %v763_v16 }
  0x46   : > { %681 = vmatprep.subr.bf16.mxu0 %v817_v0  ;;  %701 = vmatprep.subr.bf16.mxu1 %v817_v0 }
  0x49   : > { %682 = vmatpush3.bf16.msra.mxu0 %v764_v17  ;;  %702 = vmatpush3.bf16.msra.mxu1 %v765_v18 }
  0x4a   : > { %707 = vmatprep.subr.bf16.mxu0 %v817_v0 }
  0x4c   : > { %684 = vmatmul.mubr.bf16.vlgmr.msra.gmra.mrb[0].mxu0 %v215_v21  ;;  %704 = vmatmul.mubr.bf16.vlgmr.msra.gmra.mrb[0].mxu1 %v196_v22 }
  0x4d   : > { %708 = vmatpush3.bf16.msra.mxu0 %v766_v23  ;;  %723 = vmatprep.mubr.msk.bf16.mxu0 %vm818_vm0, %v817_v0 }
  0x4e   : > { %709 = vmatprep.subr.bf16.mxu0 %v817_v0 }
  0x51   : > { %710 = vmatpush3.bf16.msra.mxu0 %v767_v24 }
  0x52   : > { %711 = vmatprep.subr.bf16.mxu0 %v817_v0 }
  0x55   : > { %712 = vmatpush3.bf16.msra.mxu0 %v768_v25 }
  0x56   : > { %713 = vmatprep.subr.bf16.mxu0 %v817_v0 }
  0x59   : > { %714 = vmatpush3.bf16.msra.mxu0 %v769_v26 }
  0x5a   : > { %715 = vmatprep.subr.bf16.mxu0 %v817_v0 }
  0x5d   : > { %716 = vmatpush3.bf16.msra.mxu0 %v770_v27 }
  0x5e   : > { %717 = vmatprep.subr.bf16.mxu0 %v817_v0 }
  0x61   : > { %718 = vmatpush3.bf16.msra.mxu0 %v771_v28 }
  0x62   : > { %719 = vmatprep.subr.bf16.mxu0 %v817_v0 }
  0x65   : > { %720 = vmatpush3.bf16.msra.mxu0 %v772_v29 }
  0x66   : > { %721 = vmatprep.subr.bf16.mxu0 %v817_v0 }
  0x69   : > { %722 = vmatpush3.bf16.msra.mxu0 %v773_v30 }
  0x6c   : > { %724 = vmatmul.mubr.bf16.vlgmr.msra.gmra.mrb[4].mxu0 %v413_v33 }
 0x11f   : > { %v315_v34 = vpop.f32.mrb[0].mxu0  ;;  %v404_v35 = vpop.f32.mrb[0].mxu1 }
 0x120   : > { %v685_v36 = vpop.f32.mrb[1].mxu0  ;;  %v405_v37 = vadd.f32 %v404_v35, %v315_v34  ;;  %v705_v38 = vpop.f32.mrb[1].mxu1 }
 0x121   : > { %v318_v39 = vpop.f32.mrb[2].mxu0  ;;  %v407_v40 = vpop.f32.mrb[2].mxu1 }
 0x122   : > { %v686_v41 = vpop.f32.mrb[3].mxu0  ;;  %v408_v42 = vadd.f32 %v407_v40, %v318_v39  ;;  %v706_v43 = vpop.f32.mrb[3].mxu1 }
 0x13f   : > { %v513_v44 = vpop.f32.mrb[4].mxu0 }
 0x140   : > { %v520_v46 = vadd.f32 %v513_v44, %v405_v37  ;;  %v725_v47 = vpop.f32.mrb[5].mxu0 }
 0x141   : > { %v516_v48 = vpop.f32.mrb[6].mxu0 }
 0x142   : > { %v529_v49 = vadd.f32 %v635_v45, %v520_v46  ;;  %v521_v50 = vadd.f32 %v516_v48, %v408_v42  ;;  %v726_v51 = vpop.f32.mrb[7].mxu0 }
 0x144   : > { %531 = vst [vmem:[%s185_s11] sm:$0xff] %v529_v49  ;;  %v530_v52 = vadd.f32 %v635_v45, %v521_v50 }
 0x146   : > { %532 = vst [vmem:[%s185_s11 + $0x8] sm:$0xff] %v530_v52 }
 0x147 PF: > { %s14_s12 = sadd.s32 1, %s812_s12  }
 0x148   : > { %p11_p3 = scmp.ge.s32.totalorder %s14_s12, 4  }
 0x14a   :  { %13 = sbr.rel (!%p11_p3) target bundleno = 1 (0x1), region = 69 }
 0x151   :  { %554 = vsyncpa [#allocation4], 1 }
 0x152   :  { %556 = vsyncpa [#allocation4 + $0x1], 1 }

// kernel: _lambda_.5
= control target key start
LH: loop header
LB: loop body
LE: loop exit
PB: predicated region body
PF: predicated region fallthrough
CT: control target
= control target key end

     0   :  { %s1193_s30 = smov 0   ;;  %s1382_s0 = inlined_call_operand.vmem [shape: f32[2,16,128], index: 0, kind: input, shape index: {}]   ;;  %s1383_s1 = inlined_call_operand.vmem [shape: f32[1,128], index: 1, kind: input, shape index: {}]   ;;  %s1384_s2 = inlined_call_operand.vmem [shape: f32[1,128], index: 2, kind: input, shape index: {}, may-alias: {2,6}]   ;;  %s1385_s3 = inlined_call_operand.vmem [shape: bf16[3,128,128], index: 3, kind: input, shape index: {}]   ;;  %s1386_s4 = inlined_call_operand.vmem [shape: f32[1,128], index: 4, kind: input, shape index: {}]   ;;  %s1387_s5 = inlined_call_operand.vmem [shape: f32[1,128], index: 5, kind: input, shape index: {}]   ;;  %s1388_s6 = inlined_call_operand.vmem [shape: f32[1,128], index: 6, kind: input, shape index: {}, may-alias: {2,6}]   ;;  %s1389_s7 = inlined_call_operand.vmem [shape: bf16[128,128], index: 7, kind: input, shape index: {}]   ;;  %s1390_s8 = inlined_call_operand.vmem [shape: f32[1,128], index: 8, kind: input, shape index: {}]   ;;  %s1391_s9 = inlined_call_operand.vmem [shape: f32[2,16,128], index: 9, kind: output, shape index: {}]  }
   0x1 LB: > { %s892_s10 = sadd.s32 4294967295, %s1139_s30   ;;  %p896_p0 = scmp.ge.s32.totalorder %s1139_s30, 1  ;;  %s1139_s30 = sphi %s1193_s30, %s19_s30  }
   0x2   : > { %p287_p1 = scmp.lt.s32.totalorder %s1139_s30, 3 }
   0x4   : > { %p288_p2 = pnand %p896_p0, %p287_p1 }
   0x5   : > { %v1101_v0 = vld [vmem:[%s1385_s3 + $0x40] sm:$0xff] (!%p288_p2)   ;;  %v1141_v1 = vmov (!%p288_p2), 0.0   ;;  %v1103_v3 = vld [vmem:[%s1385_s3 + $0x48] sm:$0xff] (!%p288_p2)   ;;  %vm1142_vm0 = vmmov (!%p288_p2), 0   ;;  %p323_p3 = scmp.lt.s32.totalorder (!%p288_p2), %s892_s10, 1  ;;  %v1105_v5 = vld [vmem:[%s1385_s3 + $0x50] sm:$0xff] (!%p288_p2)  }
   0x6   : > { %291 = sbr.rel (%p288_p2) target bundleno = 515 (0x203), region = 56  ;;  %1011 = vmatprep.subr.bf16.mxu0 (!%p288_p2), %v1141_v1  ;;  %356 = vst [vmem:[#allocation2] sm:$0xff] (!%p288_p2), %v1141_v1  ;;  %357 = vst [vmem:[#allocation2 + $0x8] sm:$0xff] (!%p288_p2), %v1141_v1  ;;  %1031 = vmatprep.subr.bf16.mxu1 (!%p288_p2), %v1141_v1  ;;  %v1102_v2 = vld [vmem:[%s1385_s3] sm:$0xff] (!%p288_p2)   ;;  %v1104_v4 = vld [vmem:[%s1385_s3 + $0x8] sm:$0xff] (!%p288_p2)  }
   0x7   : > { %358 = vst [vmem:[#allocation2 + $0x10] sm:$0x3] (!%p288_p2), %v1141_v1  ;;  %1012 = vmatpush3.bf16.msra.mxu0 (!%p288_p2), %v1101_v0  ;;  %1027 = vmatprep.mubr.msk.bf16.mxu0 (!%p288_p2), %vm1142_vm0, %v1141_v1  ;;  %v1106_v6 = vld [vmem:[%s1385_s3 + $0x10] sm:$0xff] (!%p288_p2)   ;;  %v1107_v7 = vld [vmem:[%s1385_s3 + $0x58] sm:$0xff] (!%p288_p2)   ;;  %v1109_v9 = vld [vmem:[%s1385_s3 + $0x60] sm:$0xff] (!%p288_p2)  }
   0x8   : > { %1032 = vmatpush3.bf16.msra.mxu1 (!%p288_p2), %v1102_v2  ;;  %1013 = vmatprep.subr.bf16.mxu0 (!%p288_p2), %v1141_v1  ;;  %v1108_v8 = vld [vmem:[%s1385_s3 + $0x18] sm:$0xff] (!%p288_p2)   ;;  %v1110_v10 = vld [vmem:[%s1385_s3 + $0x20] sm:$0xff] (!%p288_p2)   ;;  %v1111_v17 = vld [vmem:[%s1385_s3 + $0x68] sm:$0xff] (!%p288_p2)  }
   0x9   : > { %1033 = vmatprep.subr.bf16.mxu1 (!%p288_p2), %v1141_v1  ;;  %1047 = vmatprep.mubr.msk.bf16.mxu1 (!%p288_p2), %vm1142_vm0, %v1141_v1  ;;  %v901_v13 = vld [vmem:[%s1383_s1] ss:$0 sm:$0xff] (!%p288_p2)  ;;  %v1112_v18 = vld [vmem:[%s1385_s3 + $0x28] sm:$0xff] (!%p288_p2)   ;;  %v1113_v21 = vld [vmem:[%s1385_s3 + $0x70] sm:$0xff] (!%p288_p2)  }
   0xa   : > { %v902_v16 = vld [vmem:[%s1384_s2] ss:$0 sm:$0xff] (!%p288_p2)  ;;  %v1114_v24 = vld [vmem:[%s1385_s3 + $0x30] sm:$0xff] (!%p288_p2)   ;;  %v1115_v25 = vld [vmem:[%s1385_s3 + $0x78] sm:$0xff] (!%p288_p2)  }
   0xb   : > { %1014 = vmatpush3.bf16.msra.mxu0 (!%p288_p2), %v1103_v3  ;;  %v1116_v26 = vld [vmem:[%s1385_s3 + $0x38] sm:$0xff] (!%p288_p2)   ;;  %v1117_v30 = vld [vmem:[%s1385_s3 + $0x80] sm:$0xff] (!%p288_p2)   ;;  %v1118_v32 = vld [vmem:[%s1385_s3 + $0x88] sm:$0xff] (!%p288_p2)  }
   0xc   : > { %1034 = vmatpush3.bf16.msra.mxu1 (!%p288_p2), %v1104_v4  ;;  %1015 = vmatprep.subr.bf16.mxu0 (!%p288_p2), %v1141_v1  ;;  %v1119_v33 = vld [vmem:[%s1385_s3 + $0x90] sm:$0xff] (!%p288_p2)   ;;  %v1120_v34 = vld [vmem:[%s1385_s3 + $0x98] sm:$0xff] (!%p288_p2)   ;;  %v1121_v35 = vld [vmem:[%s1385_s3 + $0xa0] sm:$0xff] (!%p288_p2)  }
   0xd   : > { %s1393_s10 = smov (!%p323_p3, %s892_s10), 1  ;;  %1035 = vmatprep.subr.bf16.mxu1 %v1141_v1  ;;  %v1122_v36 = vld [vmem:[%s1385_s3 + $0xa8] sm:$0xff]   ;;  %v1123_v37 = vld [vmem:[%s1385_s3 + $0xb0] sm:$0xff]   ;;  %v1124_v38 = vld [vmem:[%s1385_s3 + $0xb8] sm:$0xff]  }
   0xe   : > { %s973_s25 = sshll.u32 %s1393_s10, 4  ;;  %v1125_v42 = vld [vmem:[%s1389_s7] sm:$0xff]   ;;  %v1126_v43 = vld [vmem:[%s1389_s7 + $0x8] sm:$0xff]   ;;  %v1127_v44 = vld [vmem:[%s1389_s7 + $0x10] sm:$0xff]  }
   0xf   : > { %1016 = vmatpush3.bf16.msra.mxu0 %v1105_v5  ;;  %s327_s11 = scalar_lea.vmem %s1382_s0, %s973_s25  ;;  %v1128_v45 = vld [vmem:[%s1389_s7 + $0x18] sm:$0xff]   ;;  %v1129_v46 = vld [vmem:[%s1389_s7 + $0x20] sm:$0xff]   ;;  %v1130_v47 = vld [vmem:[%s1389_s7 + $0x28] sm:$0xff]   ;;  %s332_s20 = scalar_lea.vmem %s1391_s9, %s973_s25 }
  0x10   : > { %1036 = vmatpush3.bf16.msra.mxu1 %v1106_v6  ;;  %1017 = vmatprep.subr.bf16.mxu0 %v1141_v1  ;;  %v1256_v11 = vld [vmem:[%s327_s11] sm:$0xff]  ;;  %v1258_v12 = vld [vmem:[%s327_s11 + $0x8] sm:$0xff]  ;;  %v1131_v48 = vld [vmem:[%s1389_s7 + $0x30] sm:$0xff]  }
  0x11   : > { %1037 = vmatprep.subr.bf16.mxu1 %v1141_v1  ;;  %v343_v14 = vmul.f32 %v901_v13, %v1256_v11  ;;  %v344_v15 = vmul.f32 %v901_v13, %v1258_v12  ;;  %v1132_v49 = vld [vmem:[%s1389_s7 + $0x38] sm:$0xff]   ;;  %v959_v61 = vld [vmem:[%s1386_s4] ss:$0 sm:$0xff] }
  0x12   : > { %v960_v0 = vld [vmem:[%s1387_s5] ss:$0 sm:$0xff] }
  0x13   : > { %1018 = vmatpush3.bf16.msra.mxu0 %v1107_v7  ;;  %v352_v19 = vadd.f32 %v902_v16, %v343_v14  ;;  %v353_v20 = vadd.f32 %v902_v16, %v344_v15  ;;  %v961_v5 = vld [vmem:[%s1388_s6] ss:$0 sm:$0xff] }
  0x14   : > { %1038 = vmatpush3.bf16.msra.mxu1 %v1108_v8  ;;  %1019 = vmatprep.subr.bf16.mxu0 %v1141_v1 }
  0x15   : > { %1039 = vmatprep.subr.bf16.mxu1 %v1141_v1  ;;  %v354_v22 = vmax.f32 %v352_v19, 0.0  ;;  %v355_v23 = vmax.f32 %v353_v20, 0.0 }
  0x17   : > { %1020 = vmatpush3.bf16.msra.mxu0 %v1109_v9  ;;  %359 = vst [vmem:[#allocation2 + $0x1] sm:$0xff] %v354_v22  ;;  %360 = vst [vmem:[#allocation2 + $0x9] sm:$0xff] %v355_v23  ;;  %v382_v27 = vpack.c.bf16 %v355_v23, %v354_v22 }
  0x18   : > { %1040 = vmatpush3.bf16.msra.mxu1 %v1110_v10  ;;  %1021 = vmatprep.subr.bf16.mxu0 %v1141_v1 }
  0x19   : > { %1041 = vmatprep.subr.bf16.mxu1 %v1141_v1 }
  0x1b   : > { %1022 = vmatpush3.bf16.msra.mxu0 %v1111_v17  ;;  %v970_v17 = vld [vmem:[%s1390_s8] ss:$0 sm:$0xff] }
  0x1c   : > { %1042 = vmatpush3.bf16.msra.mxu1 %v1112_v18  ;;  %1023 = vmatprep.subr.bf16.mxu0 %v1141_v1 }
  0x1d   : > { %1043 = vmatprep.subr.bf16.mxu1 %v1141_v1 }
  0x1e   : > { %v361_v28 = vld [vmem:[#allocation2] sm:$0xff]  ;;  %v362_v29 = vld [vmem:[#allocation2 + $0x8] sm:$0xff] }
  0x1f   : > { %1024 = vmatpush3.bf16.msra.mxu0 %v1113_v21  ;;  %v363_v31 = vpack.c.bf16 %v362_v29, %v361_v28  ;;  %v578_v39 = vld [vmem:[#allocation2 + $0x2] sm:$0xff]  ;;  %v579_v40 = vld [vmem:[#allocation2 + $0xa] sm:$0xff] }
  0x20   : > { %1044 = vmatpush3.bf16.msra.mxu1 %v1114_v24  ;;  %1025 = vmatprep.subr.bf16.mxu0 %v1141_v1  ;;  %v580_v41 = vpack.c.bf16 %v579_v40, %v578_v39 }
  0x21   : > { %1045 = vmatprep.subr.bf16.mxu1 %v1141_v1 }
  0x23   : > { %1026 = vmatpush3.bf16.msra.mxu0 %v1115_v25 }
  0x24   : > { %1046 = vmatpush3.bf16.msra.mxu1 %v1116_v26  ;;  %1051 = vmatprep.subr.bf16.mxu0 %v1141_v1 }
  0x25   : > { %1071 = vmatprep.subr.bf16.mxu1 %v1141_v1 }
  0x26   : > { %1028 = vmatmul.mubr.bf16.vlgmr.msra.gmra.mrb[0].mxu0 %v382_v27 }
  0x27   : > { %1048 = vmatmul.mubr.bf16.vlgmr.msra.gmra.mrb[0].mxu1 %v363_v31  ;;  %1052 = vmatpush3.bf16.msra.mxu0 %v1117_v30 }
  0x28   : > { %1053 = vmatprep.subr.bf16.mxu0 %v1141_v1  ;;  %1067 = vmatprep.mubr.msk.bf16.mxu0 %vm1142_vm0, %v1141_v1 }
  0x29   : > { %1087 = vmatprep.mubr.msk.bf16.mxu1 %vm1142_vm0, %v1141_v1  ;;  %1072 = vmatpush3.bf16.msra.mxu1 %v1125_v42 }
  0x2a   : > { %1073 = vmatprep.subr.bf16.mxu1 %v1141_v1 }
  0x2b   : > { %1054 = vmatpush3.bf16.msra.mxu0 %v1118_v32 }
  0x2c   : > { %1055 = vmatprep.subr.bf16.mxu0 %v1141_v1 }
  0x2d   : > { %1074 = vmatpush3.bf16.msra.mxu1 %v1126_v43 }
  0x2e   : > { %1075 = vmatprep.subr.bf16.mxu1 %v1141_v1 }
  0x2f   : > { %1056 = vmatpush3.bf16.msra.mxu0 %v1119_v33 }
  0x30   : > { %1057 = vmatprep.subr.bf16.mxu0 %v1141_v1 }
  0x31   : > { %1076 = vmatpush3.bf16.msra.mxu1 %v1127_v44 }
  0x32   : > { %1077 = vmatprep.subr.bf16.mxu1 %v1141_v1 }
  0x33   : > { %1058 = vmatpush3.bf16.msra.mxu0 %v1120_v34 }
  0x34   : > { %1059 = vmatprep.subr.bf16.mxu0 %v1141_v1 }
  0x35   : > { %1078 = vmatpush3.bf16.msra.mxu1 %v1128_v45 }
  0x36   : > { %1079 = vmatprep.subr.bf16.mxu1 %v1141_v1 }
  0x37   : > { %1060 = vmatpush3.bf16.msra.mxu0 %v1121_v35 }
  0x38   : > { %1061 = vmatprep.subr.bf16.mxu0 %v1141_v1 }
  0x39   : > { %1080 = vmatpush3.bf16.msra.mxu1 %v1129_v46 }
  0x3a   : > { %1081 = vmatprep.subr.bf16.mxu1 %v1141_v1 }
  0x3b   : > { %1062 = vmatpush3.bf16.msra.mxu0 %v1122_v36 }
  0x3c   : > { %1063 = vmatprep.subr.bf16.mxu0 %v1141_v1 }
  0x3d   : > { %1082 = vmatpush3.bf16.msra.mxu1 %v1130_v47 }
  0x3e   : > { %1083 = vmatprep.subr.bf16.mxu1 %v1141_v1 }
  0x3f   : > { %1064 = vmatpush3.bf16.msra.mxu0 %v1123_v37 }
  0x40   : > { %1065 = vmatprep.subr.bf16.mxu0 %v1141_v1 }
  0x41   : > { %1084 = vmatpush3.bf16.msra.mxu1 %v1131_v48 }
  0x42   : > { %1085 = vmatprep.subr.bf16.mxu1 %v1141_v1 }
  0x43   : > { %1066 = vmatpush3.bf16.msra.mxu0 %v1124_v38 }
  0x45   : > { %1086 = vmatpush3.bf16.msra.mxu1 %v1132_v49 }
  0x46   : > { %1068 = vmatmul.mubr.bf16.vlgmr.msra.gmra.mrb[4].mxu0 %v580_v41 }
  0xf9   : > { %v482_v50 = vpop.f32.mrb[0].mxu0 }
  0xfa   : > { %v571_v51 = vpop.f32.mrb[0].mxu1  ;;  %v1029_v52 = vpop.f32.mrb[1].mxu0 }
  0xfb   : > { %v572_v53 = vadd.f32 %v571_v51, %v482_v50  ;;  %v1049_v54 = vpop.f32.mrb[1].mxu1  ;;  %v485_v55 = vpop.f32.mrb[2].mxu0 }
  0xfc   : > { %v574_v56 = vpop.f32.mrb[2].mxu1  ;;  %v1030_v57 = vpop.f32.mrb[3].mxu0 }
  0xfd   : > { %v575_v58 = vadd.f32 %v574_v56, %v485_v55  ;;  %v1050_v59 = vpop.f32.mrb[3].mxu1 }
 0x119   : > { %v680_v60 = vpop.f32.mrb[4].mxu0 }
 0x11a   : > { %v687_v62 = vadd.f32 %v680_v60, %v572_v53  ;;  %v1069_v63 = vpop.f32.mrb[5].mxu0 }
 0x11b   : > { %v683_v1 = vpop.f32.mrb[6].mxu0 }
 0x11c   : > { %v696_v2 = vadd.f32 %v959_v61, %v687_v62  ;;  %v688_v3 = vadd.f32 %v683_v1, %v575_v58  ;;  %v1070_v4 = vpop.f32.mrb[7].mxu0 }
 0x11e   : > { %v705_v6 = vmul.f32 %v960_v0, %v696_v2  ;;  %v697_v7 = vadd.f32 %v959_v61, %v688_v3 }
 0x120   : > { %v714_v8 = vadd.f32 %v961_v5, %v705_v6  ;;  %v706_v9 = vmul.f32 %v960_v0, %v697_v7 }
 0x122   : > { %v715_v10 = vadd.f32 %v961_v5, %v706_v9  ;;  %v716_v13 = vmax.f32 %v714_v8, 0.0 }
 0x124   : > { %v717_v14 = vmax.f32 %v715_v10, 0.0 }
 0x126   : > { %v718_v15 = vpack.c.bf16 %v717_v14, %v716_v13 }
 0x128   : > { %1088 = vmatmul.mubr.bf16.vlgmr.msra.gmra.mrb[4].mxu1 %v718_v15 }
 0x1fb   : > { %v817_v16 = vpop.f32.mrb[4].mxu1 }
 0x1fc   : > { %v824_v18 = vadd.f32 %v817_v16, %v1256_v11  ;;  %v1089_v19 = vpop.f32.mrb[5].mxu1 }
 0x1fd   : > { %v820_v20 = vpop.f32.mrb[6].mxu1 }
 0x1fe   : > { %v833_v21 = vadd.f32 %v970_v17, %v824_v18  ;;  %v825_v22 = vadd.f32 %v820_v20, %v1258_v12  ;;  %v1090_v23 = vpop.f32.mrb[7].mxu1 }
 0x200   : > { %835 = vst [vmem:[%s332_s20] sm:$0xff] %v833_v21  ;;  %v834_v24 = vadd.f32 %v970_v17, %v825_v22 }
 0x202   : > { %836 = vst [vmem:[%s332_s20 + $0x8] sm:$0xff] %v834_v24 }
 0x203 PF: > { %s19_s30 = sadd.s32 1, %s1139_s30  }
 0x204   : > { %p16_p4 = scmp.ge.s32.totalorder %s19_s30, 4  }
 0x206   :  { %18 = sbr.rel (!%p16_p4) target bundleno = 1 (0x1), region = 88 }

// kernel: _lambda_.7
= control target key start
LH: loop header
LB: loop body
LE: loop exit
PB: predicated region body
PF: predicated region fallthrough
CT: control target
= control target key end

     0   :  { %s1184_s30 = smov 0   ;;  %s1370_s0 = inlined_call_operand.vmem [shape: f32[2,16,128], index: 0, kind: input, shape index: {}]   ;;  %s1371_s1 = inlined_call_operand.vmem [shape: f32[1,128], index: 1, kind: input, shape index: {}]   ;;  %s1372_s2 = inlined_call_operand.vmem [shape: f32[1,128], index: 2, kind: input, shape index: {}, may-alias: {2,6}]   ;;  %s1373_s3 = inlined_call_operand.vmem [shape: bf16[3,128,128], index: 3, kind: input, shape index: {}]   ;;  %s1374_s4 = inlined_call_operand.vmem [shape: f32[1,128], index: 4, kind: input, shape index: {}]   ;;  %s1375_s5 = inlined_call_operand.vmem [shape: f32[1,128], index: 5, kind: input, shape index: {}]   ;;  %s1376_s6 = inlined_call_operand.vmem [shape: f32[1,128], index: 6, kind: input, shape index: {}, may-alias: {2,6}]   ;;  %s1377_s7 = inlined_call_operand.vmem [shape: bf16[128,128], index: 7, kind: input, shape index: {}]   ;;  %s1378_s8 = inlined_call_operand.vmem [shape: f32[1,128], index: 8, kind: input, shape index: {}]   ;;  %s1379_s9 = inlined_call_operand.vmem [shape: f32[2,1,128], index: 9, kind: output, shape index: {}]  }
   0x1 LB: > { %s886_s10 = sadd.s32 4294967295, %s1130_s30   ;;  %p890_p0 = scmp.ge.s32.totalorder %s1130_s30, 1  ;;  %s1130_s30 = sphi %s1184_s30, %s19_s30  }
   0x2   : > { %p287_p1 = scmp.lt.s32.totalorder %s1130_s30, 3 }
   0x4   : > { %p288_p2 = pnand %p890_p0, %p287_p1 }
   0x5   : > { %v1092_v0 = vld [vmem:[%s1373_s3 + $0x40] sm:$0xff] (!%p288_p2)   ;;  %v1132_v1 = vmov (!%p288_p2), 0.0   ;;  %v1094_v3 = vld [vmem:[%s1373_s3 + $0x48] sm:$0xff] (!%p288_p2)   ;;  %vm1133_vm0 = vmmov (!%p288_p2), 0   ;;  %p321_p3 = scmp.lt.s32.totalorder (!%p288_p2), %s886_s10, 1  ;;  %v1096_v5 = vld [vmem:[%s1373_s3 + $0x50] sm:$0xff] (!%p288_p2)  }
   0x6   : > { %291 = sbr.rel (%p288_p2) target bundleno = 529 (0x211), region = 56  ;;  %1002 = vmatprep.subr.bf16.mxu0 (!%p288_p2), %v1132_v1  ;;  %352 = vst [vmem:[#allocation2] sm:$0xff] (!%p288_p2), %v1132_v1  ;;  %353 = vst [vmem:[#allocation2 + $0x8] sm:$0xff] (!%p288_p2), %v1132_v1  ;;  %1022 = vmatprep.subr.bf16.mxu1 (!%p288_p2), %v1132_v1  ;;  %v1093_v2 = vld [vmem:[%s1373_s3] sm:$0xff] (!%p288_p2)   ;;  %v1095_v4 = vld [vmem:[%s1373_s3 + $0x8] sm:$0xff] (!%p288_p2)  }
   0x7   : > { %354 = vst [vmem:[#allocation2 + $0x10] sm:$0xf] (!%p288_p2), %v1132_v1  ;;  %1003 = vmatpush3.bf16.msra.mxu0 (!%p288_p2), %v1092_v0  ;;  %1018 = vmatprep.mubr.msk.bf16.mxu0 (!%p288_p2), %vm1133_vm0, %v1132_v1  ;;  %v1097_v6 = vld [vmem:[%s1373_s3 + $0x10] sm:$0xff] (!%p288_p2)   ;;  %v1098_v7 = vld [vmem:[%s1373_s3 + $0x58] sm:$0xff] (!%p288_p2)   ;;  %v1100_v9 = vld [vmem:[%s1373_s3 + $0x60] sm:$0xff] (!%p288_p2)  }
   0x8   : > { %1023 = vmatpush3.bf16.msra.mxu1 (!%p288_p2), %v1093_v2  ;;  %1004 = vmatprep.subr.bf16.mxu0 (!%p288_p2), %v1132_v1  ;;  %v1099_v8 = vld [vmem:[%s1373_s3 + $0x18] sm:$0xff] (!%p288_p2)   ;;  %v1101_v10 = vld [vmem:[%s1373_s3 + $0x20] sm:$0xff] (!%p288_p2)   ;;  %v1102_v17 = vld [vmem:[%s1373_s3 + $0x68] sm:$0xff] (!%p288_p2)  }
   0x9   : > { %1024 = vmatprep.subr.bf16.mxu1 (!%p288_p2), %v1132_v1  ;;  %1038 = vmatprep.mubr.msk.bf16.mxu1 (!%p288_p2), %vm1133_vm0, %v1132_v1  ;;  %v893_v13 = vld [vmem:[%s1371_s1] ss:$0 sm:$0xff] (!%p288_p2)  ;;  %v1103_v18 = vld [vmem:[%s1373_s3 + $0x28] sm:$0xff] (!%p288_p2)   ;;  %v1104_v21 = vld [vmem:[%s1373_s3 + $0x70] sm:$0xff] (!%p288_p2)  }
   0xa   : > { %v894_v16 = vld [vmem:[%s1372_s2] ss:$0 sm:$0xff] (!%p288_p2)  ;;  %v1105_v24 = vld [vmem:[%s1373_s3 + $0x30] sm:$0xff] (!%p288_p2)   ;;  %v1106_v25 = vld [vmem:[%s1373_s3 + $0x78] sm:$0xff] (!%p288_p2)  }
   0xb   : > { %1005 = vmatpush3.bf16.msra.mxu0 (!%p288_p2), %v1094_v3  ;;  %v1107_v26 = vld [vmem:[%s1373_s3 + $0x38] sm:$0xff] (!%p288_p2)   ;;  %v1108_v30 = vld [vmem:[%s1373_s3 + $0x80] sm:$0xff] (!%p288_p2)   ;;  %v1109_v32 = vld [vmem:[%s1373_s3 + $0x88] sm:$0xff] (!%p288_p2)  }
   0xc   : > { %1025 = vmatpush3.bf16.msra.mxu1 (!%p288_p2), %v1095_v4  ;;  %1006 = vmatprep.subr.bf16.mxu0 (!%p288_p2), %v1132_v1  ;;  %v1110_v33 = vld [vmem:[%s1373_s3 + $0x90] sm:$0xff] (!%p288_p2)   ;;  %v1111_v34 = vld [vmem:[%s1373_s3 + $0x98] sm:$0xff] (!%p288_p2)   ;;  %v1112_v35 = vld [vmem:[%s1373_s3 + $0xa0] sm:$0xff] (!%p288_p2)  }
   0xd   : > { %s1381_s10 = smov (!%p321_p3, %s886_s10), 1  ;;  %1026 = vmatprep.subr.bf16.mxu1 %v1132_v1  ;;  %v1113_v36 = vld [vmem:[%s1373_s3 + $0xa8] sm:$0xff]   ;;  %v1114_v37 = vld [vmem:[%s1373_s3 + $0xb0] sm:$0xff]   ;;  %v1115_v38 = vld [vmem:[%s1373_s3 + $0xb8] sm:$0xff]  }
   0xe   : > { %s965_s25 = sshll.u32 %s1381_s10, 4  ;;  %v1116_v42 = vld [vmem:[%s1377_s7] sm:$0xff]   ;;  %v1117_v43 = vld [vmem:[%s1377_s7 + $0x8] sm:$0xff]   ;;  %v1118_v44 = vld [vmem:[%s1377_s7 + $0x10] sm:$0xff]   ;;  %s328_s17 = scalar_lea.vmem %s1379_s9, %s1381_s10 }
   0xf   : > { %1007 = vmatpush3.bf16.msra.mxu0 %v1096_v5  ;;  %s325_s11 = scalar_lea.vmem %s1370_s0, %s965_s25  ;;  %v1119_v45 = vld [vmem:[%s1377_s7 + $0x18] sm:$0xff]   ;;  %v1120_v46 = vld [vmem:[%s1377_s7 + $0x20] sm:$0xff]   ;;  %v1121_v47 = vld [vmem:[%s1377_s7 + $0x28] sm:$0xff]  }
  0x10   : > { %1027 = vmatpush3.bf16.msra.mxu1 %v1097_v6  ;;  %1008 = vmatprep.subr.bf16.mxu0 %v1132_v1  ;;  %v1245_v11 = vld [vmem:[%s325_s11] sm:$0xff]  ;;  %v1247_v12 = vld [vmem:[%s325_s11 + $0x8] sm:$0xff]  ;;  %v1122_v48 = vld [vmem:[%s1377_s7 + $0x30] sm:$0xff]  }
  0x11   : > { %1028 = vmatprep.subr.bf16.mxu1 %v1132_v1  ;;  %v339_v14 = vmul.f32 %v893_v13, %v1245_v11  ;;  %v340_v15 = vmul.f32 %v893_v13, %v1247_v12  ;;  %v1123_v49 = vld [vmem:[%s1377_s7 + $0x38] sm:$0xff]   ;;  %v951_v61 = vld [vmem:[%s1374_s4] ss:$0 sm:$0xff] }
  0x12   : > { %v952_v0 = vld [vmem:[%s1375_s5] ss:$0 sm:$0xff] }
  0x13   : > { %1009 = vmatpush3.bf16.msra.mxu0 %v1098_v7  ;;  %v348_v19 = vadd.f32 %v894_v16, %v339_v14  ;;  %v349_v20 = vadd.f32 %v894_v16, %v340_v15  ;;  %v953_v5 = vld [vmem:[%s1376_s6] ss:$0 sm:$0xff] }
  0x14   : > { %1029 = vmatpush3.bf16.msra.mxu1 %v1099_v8  ;;  %1010 = vmatprep.subr.bf16.mxu0 %v1132_v1 }
  0x15   : > { %1030 = vmatprep.subr.bf16.mxu1 %v1132_v1  ;;  %v350_v22 = vmax.f32 %v348_v19, 0.0  ;;  %v351_v23 = vmax.f32 %v349_v20, 0.0  ;;  %v962_v19 = vld [vmem:[%s1378_s8] ss:$0 sm:$0xff] }
  0x17   : > { %1011 = vmatpush3.bf16.msra.mxu0 %v1100_v9  ;;  %355 = vst [vmem:[#allocation2 + $0x2] sm:$0xff] %v350_v22  ;;  %356 = vst [vmem:[#allocation2 + $0xa] sm:$0xff] %v351_v23  ;;  %v378_v27 = vpack.c.bf16 %v351_v23, %v350_v22 }
  0x18   : > { %1031 = vmatpush3.bf16.msra.mxu1 %v1101_v10  ;;  %1012 = vmatprep.subr.bf16.mxu0 %v1132_v1 }
  0x19   : > { %1032 = vmatprep.subr.bf16.mxu1 %v1132_v1 }
  0x1b   : > { %1013 = vmatpush3.bf16.msra.mxu0 %v1102_v17 }
  0x1c   : > { %1033 = vmatpush3.bf16.msra.mxu1 %v1103_v18  ;;  %1014 = vmatprep.subr.bf16.mxu0 %v1132_v1 }
  0x1d   : > { %1034 = vmatprep.subr.bf16.mxu1 %v1132_v1 }
  0x1e   : > { %v357_v28 = vld [vmem:[#allocation2] sm:$0xff]  ;;  %v358_v29 = vld [vmem:[#allocation2 + $0x8] sm:$0xff] }
  0x1f   : > { %1015 = vmatpush3.bf16.msra.mxu0 %v1104_v21  ;;  %v359_v31 = vpack.c.bf16 %v358_v29, %v357_v28  ;;  %v574_v39 = vld [vmem:[#allocation2 + $0x4] sm:$0xff]  ;;  %v575_v40 = vld [vmem:[#allocation2 + $0xc] sm:$0xff] }
  0x20   : > { %1035 = vmatpush3.bf16.msra.mxu1 %v1105_v24  ;;  %1016 = vmatprep.subr.bf16.mxu0 %v1132_v1  ;;  %v576_v41 = vpack.c.bf16 %v575_v40, %v574_v39 }
  0x21   : > { %1036 = vmatprep.subr.bf16.mxu1 %v1132_v1 }
  0x23   : > { %1017 = vmatpush3.bf16.msra.mxu0 %v1106_v25 }
  0x24   : > { %1037 = vmatpush3.bf16.msra.mxu1 %v1107_v26  ;;  %1042 = vmatprep.subr.bf16.mxu0 %v1132_v1 }
  0x25   : > { %1062 = vmatprep.subr.bf16.mxu1 %v1132_v1 }
  0x26   : > { %1019 = vmatmul.mubr.bf16.vlgmr.msra.gmra.mrb[0].mxu0 %v378_v27 }
  0x27   : > { %1039 = vmatmul.mubr.bf16.vlgmr.msra.gmra.mrb[0].mxu1 %v359_v31  ;;  %1043 = vmatpush3.bf16.msra.mxu0 %v1108_v30 }
  0x28   : > { %1044 = vmatprep.subr.bf16.mxu0 %v1132_v1  ;;  %1058 = vmatprep.mubr.msk.bf16.mxu0 %vm1133_vm0, %v1132_v1 }
  0x29   : > { %1078 = vmatprep.mubr.msk.bf16.mxu1 %vm1133_vm0, %v1132_v1  ;;  %1063 = vmatpush3.bf16.msra.mxu1 %v1116_v42 }
  0x2a   : > { %1064 = vmatprep.subr.bf16.mxu1 %v1132_v1 }
  0x2b   : > { %1045 = vmatpush3.bf16.msra.mxu0 %v1109_v32 }
  0x2c   : > { %1046 = vmatprep.subr.bf16.mxu0 %v1132_v1 }
  0x2d   : > { %1065 = vmatpush3.bf16.msra.mxu1 %v1117_v43 }
  0x2e   : > { %1066 = vmatprep.subr.bf16.mxu1 %v1132_v1 }
  0x2f   : > { %1047 = vmatpush3.bf16.msra.mxu0 %v1110_v33 }
  0x30   : > { %1048 = vmatprep.subr.bf16.mxu0 %v1132_v1 }
  0x31   : > { %1067 = vmatpush3.bf16.msra.mxu1 %v1118_v44 }
  0x32   : > { %1068 = vmatprep.subr.bf16.mxu1 %v1132_v1 }
  0x33   : > { %1049 = vmatpush3.bf16.msra.mxu0 %v1111_v34 }
  0x34   : > { %1050 = vmatprep.subr.bf16.mxu0 %v1132_v1 }
  0x35   : > { %1069 = vmatpush3.bf16.msra.mxu1 %v1119_v45 }
  0x36   : > { %1070 = vmatprep.subr.bf16.mxu1 %v1132_v1 }
  0x37   : > { %1051 = vmatpush3.bf16.msra.mxu0 %v1112_v35 }
  0x38   : > { %1052 = vmatprep.subr.bf16.mxu0 %v1132_v1 }
  0x39   : > { %1071 = vmatpush3.bf16.msra.mxu1 %v1120_v46 }
  0x3a   : > { %1072 = vmatprep.subr.bf16.mxu1 %v1132_v1 }
  0x3b   : > { %1053 = vmatpush3.bf16.msra.mxu0 %v1113_v36 }
  0x3c   : > { %1054 = vmatprep.subr.bf16.mxu0 %v1132_v1 }
  0x3d   : > { %1073 = vmatpush3.bf16.msra.mxu1 %v1121_v47 }
  0x3e   : > { %1074 = vmatprep.subr.bf16.mxu1 %v1132_v1 }
  0x3f   : > { %1055 = vmatpush3.bf16.msra.mxu0 %v1114_v37 }
  0x40   : > { %1056 = vmatprep.subr.bf16.mxu0 %v1132_v1 }
  0x41   : > { %1075 = vmatpush3.bf16.msra.mxu1 %v1122_v48 }
  0x42   : > { %1076 = vmatprep.subr.bf16.mxu1 %v1132_v1 }
  0x43   : > { %1057 = vmatpush3.bf16.msra.mxu0 %v1115_v38 }
  0x45   : > { %1077 = vmatpush3.bf16.msra.mxu1 %v1123_v49 }
  0x46   : > { %1059 = vmatmul.mubr.bf16.vlgmr.msra.gmra.mrb[4].mxu0 %v576_v41 }
  0xf9   : > { %v478_v50 = vpop.f32.mrb[0].mxu0 }
  0xfa   : > { %v567_v51 = vpop.f32.mrb[0].mxu1  ;;  %v1020_v52 = vpop.f32.mrb[1].mxu0 }
  0xfb   : > { %v568_v53 = vadd.f32 %v567_v51, %v478_v50  ;;  %v1040_v54 = vpop.f32.mrb[1].mxu1  ;;  %v481_v55 = vpop.f32.mrb[2].mxu0 }
  0xfc   : > { %v570_v56 = vpop.f32.mrb[2].mxu1  ;;  %v1021_v57 = vpop.f32.mrb[3].mxu0 }
  0xfd   : > { %v571_v58 = vadd.f32 %v570_v56, %v481_v55  ;;  %v1041_v59 = vpop.f32.mrb[3].mxu1 }
 0x119   : > { %v676_v60 = vpop.f32.mrb[4].mxu0 }
 0x11a   : > { %v683_v62 = vadd.f32 %v676_v60, %v568_v53  ;;  %v1060_v63 = vpop.f32.mrb[5].mxu0 }
 0x11b   : > { %v679_v1 = vpop.f32.mrb[6].mxu0 }
 0x11c   : > { %v692_v2 = vadd.f32 %v951_v61, %v683_v62  ;;  %v684_v3 = vadd.f32 %v679_v1, %v571_v58  ;;  %v1061_v4 = vpop.f32.mrb[7].mxu0 }
 0x11e   : > { %v701_v6 = vmul.f32 %v952_v0, %v692_v2  ;;  %v693_v7 = vadd.f32 %v951_v61, %v684_v3 }
 0x120   : > { %v710_v8 = vadd.f32 %v953_v5, %v701_v6  ;;  %v702_v9 = vmul.f32 %v952_v0, %v693_v7 }
 0x122   : > { %v711_v10 = vadd.f32 %v953_v5, %v702_v9  ;;  %v712_v13 = vmax.f32 %v710_v8, 0.0 }
 0x124   : > { %v713_v14 = vmax.f32 %v711_v10, 0.0 }
 0x126   : > { %v714_v15 = vpack.c.bf16 %v713_v14, %v712_v13 }
 0x128   : > { %1079 = vmatmul.mubr.bf16.vlgmr.msra.gmra.mrb[4].mxu1 %v714_v15 }
 0x1fb   : > { %v813_v16 = vpop.f32.mrb[4].mxu1 }
 0x1fc   : > { %v820_v17 = vadd.f32 %v813_v16, %v1245_v11  ;;  %v1080_v18 = vpop.f32.mrb[5].mxu1 }
 0x1fd   : > { %v816_v20 = vpop.f32.mrb[6].mxu1 }
 0x1fe   : > { %v821_v21 = vadd.f32 %v816_v20, %v1247_v12  ;;  %v1081_v22 = vpop.f32.mrb[7].mxu1  ;;  %v829_v23 = vadd.f32 %v962_v19, %v820_v17 }
 0x200   : > { %v830_v24 = vadd.f32 %v962_v19, %v821_v21 }
 0x202   : > { %v831_v25 = vmax.f32 %v829_v23, %v830_v24 }
 0x204   : > { %v832_v26 = vrot.slane %v831_v25, 4 }
 0x206   : > { %v833_v27 = vmax.f32 %v831_v25, %v832_v26 }
 0x208   : > { %v834_v28 = vrot.slane %v833_v27, 2 }
 0x20a   : > { %v835_v29 = vmax.f32 %v833_v27, %v834_v28 }
 0x20c   : > { %v836_v30 = vrot.slane %v835_v29, 1 }
 0x20e   : > { %v837_v11 = vmax.f32 %v835_v29, %v836_v30 }
 0x210   : > { %838 = vst [vmem:[%s328_s17] sm:$0x1] %v837_v11 }
 0x211 PF: > { %s19_s30 = sadd.s32 1, %s1130_s30  }
 0x212   : > { %p16_p4 = scmp.ge.s32.totalorder %s19_s30, 4  }
 0x214   :  { %18 = sbr.rel (!%p16_p4) target bundleno = 1 (0x1), region = 88 }

</bundles_post_ra>
